<compile_context>
chip_gen: v7x
topology: tpu7x:2x2x1
jax: 0.10.0
libtpu: 0.0.40
codegen_flags: <defaults>
</compile_context>

<pallas_src>
import functools

import jax
import jax.numpy as jnp
from jax.experimental import pallas as pl
from jax.experimental.pallas import tpu as pltpu

# ----------------------- model config (small, synthetic) --------------------
VOCAB = 64
TYPE_VOCAB = 2
MAX_POS = 16
HIDDEN = 32
NUM_HEADS = 4
HEAD_DIM = HIDDEN // NUM_HEADS
INTERMEDIATE = 64
NUM_LAYERS = 2
LN_EPS = 1e-12

BATCH = 2
SEQ = 8


# ------------------------------ kernel helpers -------------------------------
def _layernorm(x, g, b):
    """LayerNorm over last axis; f32 math (biased variance, matches torch)."""
    mu = jnp.mean(x, axis=-1, keepdims=True)
    d = x - mu
    var = jnp.mean(d * d, axis=-1, keepdims=True)
    return d * jax.lax.rsqrt(var + LN_EPS) * g + b


def _dense(x_f32, w_bf16, b_f32):
    """x (M,K) f32 @ w (K,N) bf16 -> f32 accumulate, + bias (1,N) f32."""
    y = jnp.dot(x_f32.astype(jnp.bfloat16), w_bf16,
                preferred_element_type=jnp.float32)
    return y + b_f32


# ------------------------------ fused kernel ---------------------------------
def _bert_kernel(emb_ref, mask_ref, eg_ref, eb_ref,
                 wqkv_ref, bqkv_ref, wao_ref, bao_ref, ln1g_ref, ln1b_ref,
                 wi_ref, bi_ref, wf_ref, bf_ref, ln2g_ref, ln2b_ref,
                 pw_ref, pb_ref,
                 cls_ref, pool_ref):
    """One grid step == one batch example; all weights VMEM-resident."""
    x = emb_ref[0]              # (S, H) f32 summed embeddings
    add_mask = mask_ref[0]      # (1, S) f32 additive attention mask

    # embedding LayerNorm (no residual, no zeros tensor)
    hidden = _layernorm(x, eg_ref[...], eb_ref[...])

    for l in range(NUM_LAYERS):
        # ---- self-attention: merged QKV projection (q part pre-scaled) ----
        qkv = _dense(hidden, wqkv_ref[l], bqkv_ref[l])      # (S, 3H) f32
        wo_l = wao_ref[l]                                   # (nH, dh, H) bf16

        attn = jnp.zeros((SEQ, HIDDEN), jnp.float32)
        for h in range(NUM_HEADS):
            c = h * HEAD_DIM
            qh = qkv[:, c:c + HEAD_DIM]                       # (S, dh)
            kh = qkv[:, HIDDEN + c:HIDDEN + c + HEAD_DIM]     # (S, dh)
            vh = qkv[:, 2 * HIDDEN + c:2 * HIDDEN + c + HEAD_DIM]

            s = jnp.dot(qh, kh.T, preferred_element_type=jnp.float32) + add_mask
            s = s - jnp.max(s, axis=-1, keepdims=True)
            e = jnp.exp(s)
            p = e * pl.reciprocal(jnp.sum(e, axis=-1, keepdims=True),
                                  approx=True)
            ctx_h = jnp.dot(p, vh, preferred_element_type=jnp.float32)  # (S, dh)
            # fold the output projection per head: ctx @ Wo == sum_h ctx_h @ Wo_h
            attn = attn + jnp.dot(ctx_h.astype(jnp.bfloat16), wo_l[h],
                                  preferred_element_type=jnp.float32)
        attn = attn + bao_ref[l]
        hidden = _layernorm(attn + hidden, ln1g_ref[l], ln1b_ref[l])

        # ---- feed-forward ----
        inter = jax.nn.gelu(_dense(hidden, wi_ref[l], bi_ref[l]),
                            approximate=True)
        ff = _dense(inter, wf_ref[l], bf_ref[l])
        hidden = _layernorm(ff + hidden, ln2g_ref[l], ln2b_ref[l])

    # ---- CLS + pooler (fused) ----
    cls = hidden[0:1, :]                                     # (1, H)
    cls_ref[0] = cls
    pool_ref[0] = jnp.tanh(_dense(cls, pw_ref[...], pb_ref[...]))


# --------------------------- pallas_call wrapper ------------------------------
def _resident(shape):
    """Full-array block whose index_map is constant -> stays in VMEM across grid."""
    n = len(shape)
    return pl.BlockSpec(tuple(shape), lambda i: (0,) * n)


def _fused_encoder(packed, emb, add_mask):
    """emb: (B, S, H) f32; add_mask: (B, 1, S) f32 -> (cls (B,H), pooled (B,H))."""
    B = emb.shape[0]

    in_specs = [
        pl.BlockSpec((1, SEQ, HIDDEN), lambda i: (i, 0, 0)),   # emb
        pl.BlockSpec((1, 1, SEQ), lambda i: (i, 0, 0)),        # additive mask
        _resident(packed["emb_ln_g"].shape),
        _resident(packed["emb_ln_b"].shape),
        _resident(packed["w_qkv"].shape),
        _resident(packed["b_qkv"].shape),
        _resident(packed["w_attn_out"].shape),
        _resident(packed["b_attn_out"].shape),
        _resident(packed["ln1_g"].shape),
        _resident(packed["ln1_b"].shape),
        _resident(packed["w_inter"].shape),
        _resident(packed["b_inter"].shape),
        _resident(packed["w_ffn_out"].shape),
        _resident(packed["b_ffn_out"].shape),
        _resident(packed["ln2_g"].shape),
        _resident(packed["ln2_b"].shape),
        _resident(packed["pooler_w"].shape),
        _resident(packed["pooler_b"].shape),
    ]
    out_specs = (
        pl.BlockSpec((1, 1, HIDDEN), lambda i: (i, 0, 0)),     # cls
        pl.BlockSpec((1, 1, HIDDEN), lambda i: (i, 0, 0)),     # pooled
    )
    out_shape = (jax.ShapeDtypeStruct((B, 1, HIDDEN), jnp.float32),
                 jax.ShapeDtypeStruct((B, 1, HIDDEN), jnp.float32))

    cls3, pool3 = pl.pallas_call(
        _bert_kernel,
        out_shape=out_shape,
        grid=(B,),
        in_specs=in_specs,
        out_specs=out_specs,
        compiler_params=pltpu.CompilerParams(
            dimension_semantics=("parallel",)),
    )(emb, add_mask,
      packed["emb_ln_g"], packed["emb_ln_b"],
      packed["w_qkv"], packed["b_qkv"],
      packed["w_attn_out"], packed["b_attn_out"],
      packed["ln1_g"], packed["ln1_b"],
      packed["w_inter"], packed["b_inter"],
      packed["w_ffn_out"], packed["b_ffn_out"],
      packed["ln2_g"], packed["ln2_b"],
      packed["pooler_w"], packed["pooler_b"])

    return cls3[:, 0, :], pool3[:, 0, :]


# ------------------------------ parameters -----------------------------------
def init_params(key):
    scale = 0.02
    keys = iter(jax.random.split(key, 64))

    def w(shape):
        return scale * jax.random.normal(next(keys), shape, dtype=jnp.float32)

    params = {
        "word_emb": w((VOCAB, HIDDEN)),
        "pos_emb": w((MAX_POS, HIDDEN)),
        "type_emb": w((TYPE_VOCAB, HIDDEN)),
        "emb_ln_g": jnp.ones((HIDDEN,), jnp.float32),
        "emb_ln_b": jnp.zeros((HIDDEN,), jnp.float32),
        "pooler_w": w((HIDDEN, HIDDEN)),
        "pooler_b": jnp.zeros((HIDDEN,), jnp.float32),
        "layers": [],
    }
    for _ in range(NUM_LAYERS):
        params["layers"].append({
            "wq": w((HIDDEN, HIDDEN)), "bq": jnp.zeros((HIDDEN,), jnp.float32),
            "wk": w((HIDDEN, HIDDEN)), "bk": jnp.zeros((HIDDEN,), jnp.float32),
            "wv": w((HIDDEN, HIDDEN)), "bv": jnp.zeros((HIDDEN,), jnp.float32),
            "wo": w((HIDDEN, HIDDEN)), "bo": jnp.zeros((HIDDEN,), jnp.float32),
            "attn_ln_g": jnp.ones((HIDDEN,), jnp.float32),
            "attn_ln_b": jnp.zeros((HIDDEN,), jnp.float32),
            "w_inter": w((HIDDEN, INTERMEDIATE)),
            "b_inter": jnp.zeros((INTERMEDIATE,), jnp.float32),
            "w_out": w((INTERMEDIATE, HIDDEN)),
            "b_out": jnp.zeros((HIDDEN,), jnp.float32),
            "out_ln_g": jnp.ones((HIDDEN,), jnp.float32),
            "out_ln_b": jnp.zeros((HIDDEN,), jnp.float32),
        })
    return params


def pack_params(params):
    """Stack per-layer weights, merge QKV (scale folded into Wq/bq), cast the
    matmul weight matrices to bf16 (biases / LN params stay f32)."""
    inv_sqrt_dh = 1.0 / (HEAD_DIM ** 0.5)

    def stack(fn):
        return jnp.stack([fn(lp) for lp in params["layers"]], axis=0)

    return {
        "word_emb": params["word_emb"],
        "pos_emb": params["pos_emb"],
        "type_emb": params["type_emb"],
        "emb_ln_g": params["emb_ln_g"].reshape(1, HIDDEN),
        "emb_ln_b": params["emb_ln_b"].reshape(1, HIDDEN),
        "w_qkv": stack(lambda lp: jnp.concatenate(
            [lp["wq"] * inv_sqrt_dh, lp["wk"], lp["wv"]], axis=1)
        ).astype(jnp.bfloat16),                                   # (L, H, 3H)
        "b_qkv": stack(lambda lp: jnp.concatenate(
            [lp["bq"] * inv_sqrt_dh, lp["bk"], lp["bv"]]).reshape(1, 3 * HIDDEN)),
        "w_attn_out": stack(
            lambda lp: lp["wo"].reshape(NUM_HEADS, HEAD_DIM, HIDDEN)
        ).astype(jnp.bfloat16),                                   # (L, nH, dh, H)
        "b_attn_out": stack(lambda lp: lp["bo"].reshape(1, HIDDEN)),
        "ln1_g": stack(lambda lp: lp["attn_ln_g"].reshape(1, HIDDEN)),
        "ln1_b": stack(lambda lp: lp["attn_ln_b"].reshape(1, HIDDEN)),
        "w_inter": stack(lambda lp: lp["w_inter"]).astype(jnp.bfloat16),
        "b_inter": stack(lambda lp: lp["b_inter"].reshape(1, INTERMEDIATE)),
        "w_ffn_out": stack(lambda lp: lp["w_out"]).astype(jnp.bfloat16),
        "b_ffn_out": stack(lambda lp: lp["b_out"].reshape(1, HIDDEN)),
        "ln2_g": stack(lambda lp: lp["out_ln_g"].reshape(1, HIDDEN)),
        "ln2_b": stack(lambda lp: lp["out_ln_b"].reshape(1, HIDDEN)),
        "pooler_w": params["pooler_w"].astype(jnp.bfloat16),
        "pooler_b": params["pooler_b"].reshape(1, HIDDEN),
    }


# ------------------------------- forward --------------------------------------
@jax.jit
def _bert_reps(packed, input_ids, token_type_ids, attention_mask):
    B, S = input_ids.shape
    # embedding gathers are plain-JAX glue; everything else is in the kernel
    word = packed["word_emb"][input_ids]                     # (B, S, H)
    pos = packed["pos_emb"][:S][None, :, :]                  # (1, S, H)
    typ = packed["type_emb"][token_type_ids]                 # (B, S, H)
    emb = (word + pos + typ).astype(jnp.float32)             # (B, S, H)
    add_mask = ((1.0 - attention_mask.astype(jnp.float32))
                * -1e9)[:, None, :]                          # (B, 1, S)
    return _fused_encoder(packed, emb, add_mask)


def bert_encoder_forward(packed, input_ids, token_type_ids, attention_mask,
                         rep="pooler"):
    cls, pooled = _bert_reps(packed, input_ids, token_type_ids, attention_mask)
    if rep == "cls":
        return cls
    elif rep == "pooler":
        return pooled
    else:
        raise Exception("Unknown rep `%s`" % rep)


# --------------------------------- main ----------------------------------------
if __name__ == "__main__":
    key = jax.random.PRNGKey(0)
    k_param, k_ids, k_mask = jax.random.split(key, 3)

    params = init_params(k_param)
    packed = pack_params(params)

    input_ids = jax.random.randint(k_ids, (BATCH, SEQ), 0, VOCAB, dtype=jnp.int32)
    token_type_ids = jnp.concatenate(
        [jnp.zeros((BATCH, SEQ // 2), jnp.int32),
         jnp.ones((BATCH, SEQ // 2), jnp.int32)], axis=1)
    # last two positions of the second example are padding
    attention_mask = jnp.ones((BATCH, SEQ), jnp.int32).at[1, -2:].set(0)

    pooler_out = bert_encoder_forward(packed, input_ids, token_type_ids,
                                      attention_mask, rep="pooler")
    cls_out = bert_encoder_forward(packed, input_ids, token_type_ids,
                                   attention_mask, rep="cls")

    jax.block_until_ready(pooler_out)
    jax.block_until_ready(cls_out)

    assert pooler_out.shape == (BATCH, HIDDEN)
    assert cls_out.shape == (BATCH, HIDDEN)
    assert bool(jnp.all(jnp.isfinite(pooler_out)))
    assert bool(jnp.all(jnp.isfinite(cls_out)))
    print("KERNEL_OK")
</pallas_src>

<mosaic_0001>
module attributes {stable_mosaic.version = 11 : i64} {
  func.func @_bert_kernel(%arg0: i32, %arg1: memref<1x8x32xf32, #tpu.memory_space<vmem>>, %arg2: memref<1x1x8xf32, #tpu.memory_space<vmem>>, %arg3: memref<1x32xf32, #tpu.memory_space<vmem>>, %arg4: memref<1x32xf32, #tpu.memory_space<vmem>>, %arg5: memref<2x32x96xbf16, #tpu.memory_space<vmem>>, %arg6: memref<2x1x96xf32, #tpu.memory_space<vmem>>, %arg7: memref<2x4x8x32xbf16, #tpu.memory_space<vmem>>, %arg8: memref<2x1x32xf32, #tpu.memory_space<vmem>>, %arg9: memref<2x1x32xf32, #tpu.memory_space<vmem>>, %arg10: memref<2x1x32xf32, #tpu.memory_space<vmem>>, %arg11: memref<2x32x64xbf16, #tpu.memory_space<vmem>>, %arg12: memref<2x1x64xf32, #tpu.memory_space<vmem>>, %arg13: memref<2x64x32xbf16, #tpu.memory_space<vmem>>, %arg14: memref<2x1x32xf32, #tpu.memory_space<vmem>>, %arg15: memref<2x1x32xf32, #tpu.memory_space<vmem>>, %arg16: memref<2x1x32xf32, #tpu.memory_space<vmem>>, %arg17: memref<32x32xbf16, #tpu.memory_space<vmem>>, %arg18: memref<1x32xf32, #tpu.memory_space<vmem>>, %arg19: memref<1x1x32xf32, #tpu.memory_space<vmem>>, %arg20: memref<1x1x32xf32, #tpu.memory_space<vmem>>) attributes {dimension_semantics = [#tpu.dimension_semantics<parallel>], iteration_bounds = array<i64: 2>, scalar_prefetch = 0 : i64, scratch_operands = 0 : i64, tpu.core_type = #tpu.core_type<tc>, window_params = [{transform_indices = @transform_0, window_bounds = array<i64: 1, 8, 32>}, {transform_indices = @transform_1, window_bounds = array<i64: 1, 1, 8>}, {pipeline_mode = #tpu.pipeline_mode<synchronous>, transform_indices = @transform_2, window_bounds = array<i64: 1, 32>}, {pipeline_mode = #tpu.pipeline_mode<synchronous>, transform_indices = @transform_3, window_bounds = array<i64: 1, 32>}, {pipeline_mode = #tpu.pipeline_mode<synchronous>, transform_indices = @transform_4, window_bounds = array<i64: 2, 32, 96>}, {pipeline_mode = #tpu.pipeline_mode<synchronous>, transform_indices = @transform_5, window_bounds = array<i64: 2, 1, 96>}, {pipeline_mode = #tpu.pipeline_mode<synchronous>, transform_indices = @transform_6, window_bounds = array<i64: 2, 4, 8, 32>}, {pipeline_mode = #tpu.pipeline_mode<synchronous>, transform_indices = @transform_7, window_bounds = array<i64: 2, 1, 32>}, {pipeline_mode = #tpu.pipeline_mode<synchronous>, transform_indices = @transform_8, window_bounds = array<i64: 2, 1, 32>}, {pipeline_mode = #tpu.pipeline_mode<synchronous>, transform_indices = @transform_9, window_bounds = array<i64: 2, 1, 32>}, {pipeline_mode = #tpu.pipeline_mode<synchronous>, transform_indices = @transform_10, window_bounds = array<i64: 2, 32, 64>}, {pipeline_mode = #tpu.pipeline_mode<synchronous>, transform_indices = @transform_11, window_bounds = array<i64: 2, 1, 64>}, {pipeline_mode = #tpu.pipeline_mode<synchronous>, transform_indices = @transform_12, window_bounds = array<i64: 2, 64, 32>}, {pipeline_mode = #tpu.pipeline_mode<synchronous>, transform_indices = @transform_13, window_bounds = array<i64: 2, 1, 32>}, {pipeline_mode = #tpu.pipeline_mode<synchronous>, transform_indices = @transform_14, window_bounds = array<i64: 2, 1, 32>}, {pipeline_mode = #tpu.pipeline_mode<synchronous>, transform_indices = @transform_15, window_bounds = array<i64: 2, 1, 32>}, {pipeline_mode = #tpu.pipeline_mode<synchronous>, transform_indices = @transform_16, window_bounds = array<i64: 32, 32>}, {pipeline_mode = #tpu.pipeline_mode<synchronous>, transform_indices = @transform_17, window_bounds = array<i64: 1, 32>}, {transform_indices = @transform_18, window_bounds = array<i64: 1, 1, 32>}, {transform_indices = @transform_19, window_bounds = array<i64: 1, 1, 32>}]} {
    %c0 = arith.constant 0 : index
    %c0_0 = arith.constant 0 : index
    %c0_1 = arith.constant 0 : index
    %0 = vector.load %arg1[%c0, %c0_0, %c0_1] : memref<1x8x32xf32, #tpu.memory_space<vmem>>, vector<1x8x32xf32>
    %1 = vector.shape_cast %0 : vector<1x8x32xf32> to vector<8x32xf32>
    %c0_2 = arith.constant 0 : index
    %c0_3 = arith.constant 0 : index
    %c0_4 = arith.constant 0 : index
    %2 = vector.load %arg2[%c0_2, %c0_3, %c0_4] : memref<1x1x8xf32, #tpu.memory_space<vmem>>, vector<1x1x8xf32>
    %3 = vector.shape_cast %2 : vector<1x1x8xf32> to vector<1x8xf32>
    %c0_5 = arith.constant 0 : index
    %c0_6 = arith.constant 0 : index
    %4 = vector.load %arg3[%c0_5, %c0_6] : memref<1x32xf32, #tpu.memory_space<vmem>>, vector<1x32xf32>
    %c0_7 = arith.constant 0 : index
    %c0_8 = arith.constant 0 : index
    %5 = vector.load %arg4[%c0_7, %c0_8] : memref<1x32xf32, #tpu.memory_space<vmem>>, vector<1x32xf32>
    %cst = arith.constant dense<0.000000e+00> : vector<8xf32>
    %6 = vector.multi_reduction <add>, %1, %cst [1] : vector<8x32xf32> to vector<8xf32>
    %7 = vector.shape_cast %6 : vector<8xf32> to vector<8x1xf32>
    %cst_9 = arith.constant 3.200000e+01 : f32
    %8 = vector.broadcast %cst_9 : f32 to vector<8x1xf32>
    %9 = arith.divf %7, %8 : vector<8x1xf32>
    %10 = vector.broadcast %9 : vector<8x1xf32> to vector<8x32xf32>
    %11 = arith.subf %1, %10 : vector<8x32xf32>
    %12 = arith.mulf %11, %11 : vector<8x32xf32>
    %cst_10 = arith.constant dense<0.000000e+00> : vector<8xf32>
    %13 = vector.multi_reduction <add>, %12, %cst_10 [1] : vector<8x32xf32> to vector<8xf32>
    %14 = vector.shape_cast %13 : vector<8xf32> to vector<8x1xf32>
    %cst_11 = arith.constant 3.200000e+01 : f32
    %15 = vector.broadcast %cst_11 : f32 to vector<8x1xf32>
    %16 = arith.divf %14, %15 : vector<8x1xf32>
    %cst_12 = arith.constant 9.99999996E-13 : f32
    %17 = vector.broadcast %cst_12 : f32 to vector<8x1xf32>
    %18 = arith.addf %16, %17 : vector<8x1xf32>
    %19 = math.rsqrt %18 : vector<8x1xf32>
    %20 = vector.broadcast %19 : vector<8x1xf32> to vector<8x32xf32>
    %21 = arith.mulf %11, %20 : vector<8x32xf32>
    %22 = vector.broadcast %4 : vector<1x32xf32> to vector<8x32xf32>
    %23 = arith.mulf %21, %22 : vector<8x32xf32>
    %24 = vector.broadcast %5 : vector<1x32xf32> to vector<8x32xf32>
    %25 = arith.addf %23, %24 : vector<8x32xf32>
    %c0_13 = arith.constant 0 : index
    %c0_14 = arith.constant 0 : index
    %c0_15 = arith.constant 0 : index
    %26 = vector.load %arg5[%c0_13, %c0_14, %c0_15] : memref<2x32x96xbf16, #tpu.memory_space<vmem>>, vector<1x32x96xbf16>
    %27 = vector.shape_cast %26 : vector<1x32x96xbf16> to vector<32x96xbf16>
    %c0_16 = arith.constant 0 : index
    %c0_17 = arith.constant 0 : index
    %c0_18 = arith.constant 0 : index
    %28 = vector.load %arg6[%c0_16, %c0_17, %c0_18] : memref<2x1x96xf32, #tpu.memory_space<vmem>>, vector<1x1x96xf32>
    %29 = vector.shape_cast %28 : vector<1x1x96xf32> to vector<1x96xf32>
    %30 = arith.truncf %25 : vector<8x32xf32> to vector<8x32xbf16>
    %cst_19 = arith.constant dense<0.000000e+00> : vector<8x96xf32>
    %31 = tpu.matmul %30, %27, %cst_19 {dimension_numbers = #tpu.dot_dimension_numbers<[1], [0], [0], [1], [0, 0, 1, 1], [], []>} : vector<8x32xbf16>, vector<32x96xbf16>, vector<8x96xf32> -> vector<8x96xf32>
    %32 = vector.broadcast %29 : vector<1x96xf32> to vector<8x96xf32>
    %33 = arith.addf %31, %32 : vector<8x96xf32>
    %c0_20 = arith.constant 0 : index
    %c0_21 = arith.constant 0 : index
    %c0_22 = arith.constant 0 : index
    %c0_23 = arith.constant 0 : index
    %34 = vector.load %arg7[%c0_20, %c0_21, %c0_22, %c0_23] : memref<2x4x8x32xbf16, #tpu.memory_space<vmem>>, vector<1x4x8x32xbf16>
    %35 = vector.shape_cast %34 : vector<1x4x8x32xbf16> to vector<4x8x32xbf16>
    %cst_24 = arith.constant 0.000000e+00 : f32
    %36 = vector.broadcast %cst_24 : f32 to vector<8x32xf32>
    %37 = vector.extract_strided_slice %33 {offsets = [0, 0], sizes = [8, 8], strides = [1, 1]} : vector<8x96xf32> to vector<8x8xf32>
    %38 = vector.extract_strided_slice %33 {offsets = [0, 32], sizes = [8, 8], strides = [1, 1]} : vector<8x96xf32> to vector<8x8xf32>
    %39 = vector.extract_strided_slice %33 {offsets = [0, 64], sizes = [8, 8], strides = [1, 1]} : vector<8x96xf32> to vector<8x8xf32>
    %40 = tpu.transpose %38, [1, 0] : vector<8x8xf32> -> vector<8x8xf32>
    %cst_25 = arith.constant dense<0.000000e+00> : vector<8x8xf32>
    %41 = tpu.matmul %37, %40, %cst_25 {dimension_numbers = #tpu.dot_dimension_numbers<[1], [0], [0], [1], [0, 0, 1, 1], [], []>} : vector<8x8xf32>, vector<8x8xf32>, vector<8x8xf32> -> vector<8x8xf32>
    %42 = vector.broadcast %3 : vector<1x8xf32> to vector<8x8xf32>
    %43 = arith.addf %41, %42 : vector<8x8xf32>
    %cst_26 = arith.constant dense<0xFF800000> : vector<8xf32>
    %44 = vector.multi_reduction <maximumf>, %43, %cst_26 [1] : vector<8x8xf32> to vector<8xf32>
    %45 = vector.shape_cast %44 : vector<8xf32> to vector<8x1xf32>
    %46 = vector.broadcast %45 : vector<8x1xf32> to vector<8x8xf32>
    %47 = arith.subf %43, %46 : vector<8x8xf32>
    %48 = math.exp %47 : vector<8x8xf32>
    %cst_27 = arith.constant dense<0.000000e+00> : vector<8xf32>
    %49 = vector.multi_reduction <add>, %48, %cst_27 [1] : vector<8x8xf32> to vector<8xf32>
    %50 = vector.shape_cast %49 : vector<8xf32> to vector<8x1xf32>
    %51 = tpu.reciprocal %50 {approx = true} : vector<8x1xf32> -> vector<8x1xf32>
    %52 = vector.broadcast %51 : vector<8x1xf32> to vector<8x8xf32>
    %53 = arith.mulf %48, %52 : vector<8x8xf32>
    %cst_28 = arith.constant dense<0.000000e+00> : vector<8x8xf32>
    %54 = tpu.matmul %53, %39, %cst_28 {dimension_numbers = #tpu.dot_dimension_numbers<[1], [0], [0], [1], [0, 0, 1, 1], [], []>} : vector<8x8xf32>, vector<8x8xf32>, vector<8x8xf32> -> vector<8x8xf32>
    %55 = arith.truncf %54 : vector<8x8xf32> to vector<8x8xbf16>
    %56 = vector.extract_strided_slice %35 {offsets = [0, 0, 0], sizes = [1, 8, 32], strides = [1, 1, 1]} : vector<4x8x32xbf16> to vector<1x8x32xbf16>
    %57 = vector.shape_cast %56 : vector<1x8x32xbf16> to vector<8x32xbf16>
    %cst_29 = arith.constant dense<0.000000e+00> : vector<8x32xf32>
    %58 = tpu.matmul %55, %57, %cst_29 {dimension_numbers = #tpu.dot_dimension_numbers<[1], [0], [0], [1], [0, 0, 1, 1], [], []>} : vector<8x8xbf16>, vector<8x32xbf16>, vector<8x32xf32> -> vector<8x32xf32>
    %59 = arith.addf %36, %58 : vector<8x32xf32>
    %60 = vector.extract_strided_slice %33 {offsets = [0, 8], sizes = [8, 8], strides = [1, 1]} : vector<8x96xf32> to vector<8x8xf32>
    %61 = vector.extract_strided_slice %33 {offsets = [0, 40], sizes = [8, 8], strides = [1, 1]} : vector<8x96xf32> to vector<8x8xf32>
    %62 = vector.extract_strided_slice %33 {offsets = [0, 72], sizes = [8, 8], strides = [1, 1]} : vector<8x96xf32> to vector<8x8xf32>
    %63 = tpu.transpose %61, [1, 0] : vector<8x8xf32> -> vector<8x8xf32>
    %cst_30 = arith.constant dense<0.000000e+00> : vector<8x8xf32>
    %64 = tpu.matmul %60, %63, %cst_30 {dimension_numbers = #tpu.dot_dimension_numbers<[1], [0], [0], [1], [0, 0, 1, 1], [], []>} : vector<8x8xf32>, vector<8x8xf32>, vector<8x8xf32> -> vector<8x8xf32>
    %65 = vector.broadcast %3 : vector<1x8xf32> to vector<8x8xf32>
    %66 = arith.addf %64, %65 : vector<8x8xf32>
    %cst_31 = arith.constant dense<0xFF800000> : vector<8xf32>
    %67 = vector.multi_reduction <maximumf>, %66, %cst_31 [1] : vector<8x8xf32> to vector<8xf32>
    %68 = vector.shape_cast %67 : vector<8xf32> to vector<8x1xf32>
    %69 = vector.broadcast %68 : vector<8x1xf32> to vector<8x8xf32>
    %70 = arith.subf %66, %69 : vector<8x8xf32>
    %71 = math.exp %70 : vector<8x8xf32>
    %cst_32 = arith.constant dense<0.000000e+00> : vector<8xf32>
    %72 = vector.multi_reduction <add>, %71, %cst_32 [1] : vector<8x8xf32> to vector<8xf32>
    %73 = vector.shape_cast %72 : vector<8xf32> to vector<8x1xf32>
    %74 = tpu.reciprocal %73 {approx = true} : vector<8x1xf32> -> vector<8x1xf32>
    %75 = vector.broadcast %74 : vector<8x1xf32> to vector<8x8xf32>
    %76 = arith.mulf %71, %75 : vector<8x8xf32>
    %cst_33 = arith.constant dense<0.000000e+00> : vector<8x8xf32>
    %77 = tpu.matmul %76, %62, %cst_33 {dimension_numbers = #tpu.dot_dimension_numbers<[1], [0], [0], [1], [0, 0, 1, 1], [], []>} : vector<8x8xf32>, vector<8x8xf32>, vector<8x8xf32> -> vector<8x8xf32>
    %78 = arith.truncf %77 : vector<8x8xf32> to vector<8x8xbf16>
    %79 = vector.extract_strided_slice %35 {offsets = [1, 0, 0], sizes = [1, 8, 32], strides = [1, 1, 1]} : vector<4x8x32xbf16> to vector<1x8x32xbf16>
    %80 = vector.shape_cast %79 : vector<1x8x32xbf16> to vector<8x32xbf16>
    %cst_34 = arith.constant dense<0.000000e+00> : vector<8x32xf32>
    %81 = tpu.matmul %78, %80, %cst_34 {dimension_numbers = #tpu.dot_dimension_numbers<[1], [0], [0], [1], [0, 0, 1, 1], [], []>} : vector<8x8xbf16>, vector<8x32xbf16>, vector<8x32xf32> -> vector<8x32xf32>
    %82 = arith.addf %59, %81 : vector<8x32xf32>
    %83 = vector.extract_strided_slice %33 {offsets = [0, 16], sizes = [8, 8], strides = [1, 1]} : vector<8x96xf32> to vector<8x8xf32>
    %84 = vector.extract_strided_slice %33 {offsets = [0, 48], sizes = [8, 8], strides = [1, 1]} : vector<8x96xf32> to vector<8x8xf32>
    %85 = vector.extract_strided_slice %33 {offsets = [0, 80], sizes = [8, 8], strides = [1, 1]} : vector<8x96xf32> to vector<8x8xf32>
    %86 = tpu.transpose %84, [1, 0] : vector<8x8xf32> -> vector<8x8xf32>
    %cst_35 = arith.constant dense<0.000000e+00> : vector<8x8xf32>
    %87 = tpu.matmul %83, %86, %cst_35 {dimension_numbers = #tpu.dot_dimension_numbers<[1], [0], [0], [1], [0, 0, 1, 1], [], []>} : vector<8x8xf32>, vector<8x8xf32>, vector<8x8xf32> -> vector<8x8xf32>
    %88 = vector.broadcast %3 : vector<1x8xf32> to vector<8x8xf32>
    %89 = arith.addf %87, %88 : vector<8x8xf32>
    %cst_36 = arith.constant dense<0xFF800000> : vector<8xf32>
    %90 = vector.multi_reduction <maximumf>, %89, %cst_36 [1] : vector<8x8xf32> to vector<8xf32>
    %91 = vector.shape_cast %90 : vector<8xf32> to vector<8x1xf32>
    %92 = vector.broadcast %91 : vector<8x1xf32> to vector<8x8xf32>
    %93 = arith.subf %89, %92 : vector<8x8xf32>
    %94 = math.exp %93 : vector<8x8xf32>
    %cst_37 = arith.constant dense<0.000000e+00> : vector<8xf32>
    %95 = vector.multi_reduction <add>, %94, %cst_37 [1] : vector<8x8xf32> to vector<8xf32>
    %96 = vector.shape_cast %95 : vector<8xf32> to vector<8x1xf32>
    %97 = tpu.reciprocal %96 {approx = true} : vector<8x1xf32> -> vector<8x1xf32>
    %98 = vector.broadcast %97 : vector<8x1xf32> to vector<8x8xf32>
    %99 = arith.mulf %94, %98 : vector<8x8xf32>
    %cst_38 = arith.constant dense<0.000000e+00> : vector<8x8xf32>
    %100 = tpu.matmul %99, %85, %cst_38 {dimension_numbers = #tpu.dot_dimension_numbers<[1], [0], [0], [1], [0, 0, 1, 1], [], []>} : vector<8x8xf32>, vector<8x8xf32>, vector<8x8xf32> -> vector<8x8xf32>
    %101 = arith.truncf %100 : vector<8x8xf32> to vector<8x8xbf16>
    %102 = vector.extract_strided_slice %35 {offsets = [2, 0, 0], sizes = [1, 8, 32], strides = [1, 1, 1]} : vector<4x8x32xbf16> to vector<1x8x32xbf16>
    %103 = vector.shape_cast %102 : vector<1x8x32xbf16> to vector<8x32xbf16>
    %cst_39 = arith.constant dense<0.000000e+00> : vector<8x32xf32>
    %104 = tpu.matmul %101, %103, %cst_39 {dimension_numbers = #tpu.dot_dimension_numbers<[1], [0], [0], [1], [0, 0, 1, 1], [], []>} : vector<8x8xbf16>, vector<8x32xbf16>, vector<8x32xf32> -> vector<8x32xf32>
    %105 = arith.addf %82, %104 : vector<8x32xf32>
    %106 = vector.extract_strided_slice %33 {offsets = [0, 24], sizes = [8, 8], strides = [1, 1]} : vector<8x96xf32> to vector<8x8xf32>
    %107 = vector.extract_strided_slice %33 {offsets = [0, 56], sizes = [8, 8], strides = [1, 1]} : vector<8x96xf32> to vector<8x8xf32>
    %108 = vector.extract_strided_slice %33 {offsets = [0, 88], sizes = [8, 8], strides = [1, 1]} : vector<8x96xf32> to vector<8x8xf32>
    %109 = tpu.transpose %107, [1, 0] : vector<8x8xf32> -> vector<8x8xf32>
    %cst_40 = arith.constant dense<0.000000e+00> : vector<8x8xf32>
    %110 = tpu.matmul %106, %109, %cst_40 {dimension_numbers = #tpu.dot_dimension_numbers<[1], [0], [0], [1], [0, 0, 1, 1], [], []>} : vector<8x8xf32>, vector<8x8xf32>, vector<8x8xf32> -> vector<8x8xf32>
    %111 = vector.broadcast %3 : vector<1x8xf32> to vector<8x8xf32>
    %112 = arith.addf %110, %111 : vector<8x8xf32>
    %cst_41 = arith.constant dense<0xFF800000> : vector<8xf32>
    %113 = vector.multi_reduction <maximumf>, %112, %cst_41 [1] : vector<8x8xf32> to vector<8xf32>
    %114 = vector.shape_cast %113 : vector<8xf32> to vector<8x1xf32>
    %115 = vector.broadcast %114 : vector<8x1xf32> to vector<8x8xf32>
    %116 = arith.subf %112, %115 : vector<8x8xf32>
    %117 = math.exp %116 : vector<8x8xf32>
    %cst_42 = arith.constant dense<0.000000e+00> : vector<8xf32>
    %118 = vector.multi_reduction <add>, %117, %cst_42 [1] : vector<8x8xf32> to vector<8xf32>
    %119 = vector.shape_cast %118 : vector<8xf32> to vector<8x1xf32>
    %120 = tpu.reciprocal %119 {approx = true} : vector<8x1xf32> -> vector<8x1xf32>
    %121 = vector.broadcast %120 : vector<8x1xf32> to vector<8x8xf32>
    %122 = arith.mulf %117, %121 : vector<8x8xf32>
    %cst_43 = arith.constant dense<0.000000e+00> : vector<8x8xf32>
    %123 = tpu.matmul %122, %108, %cst_43 {dimension_numbers = #tpu.dot_dimension_numbers<[1], [0], [0], [1], [0, 0, 1, 1], [], []>} : vector<8x8xf32>, vector<8x8xf32>, vector<8x8xf32> -> vector<8x8xf32>
    %124 = arith.truncf %123 : vector<8x8xf32> to vector<8x8xbf16>
    %125 = vector.extract_strided_slice %35 {offsets = [3, 0, 0], sizes = [1, 8, 32], strides = [1, 1, 1]} : vector<4x8x32xbf16> to vector<1x8x32xbf16>
    %126 = vector.shape_cast %125 : vector<1x8x32xbf16> to vector<8x32xbf16>
    %cst_44 = arith.constant dense<0.000000e+00> : vector<8x32xf32>
    %127 = tpu.matmul %124, %126, %cst_44 {dimension_numbers = #tpu.dot_dimension_numbers<[1], [0], [0], [1], [0, 0, 1, 1], [], []>} : vector<8x8xbf16>, vector<8x32xbf16>, vector<8x32xf32> -> vector<8x32xf32>
    %128 = arith.addf %105, %127 : vector<8x32xf32>
    %c0_45 = arith.constant 0 : index
    %c0_46 = arith.constant 0 : index
    %c0_47 = arith.constant 0 : index
    %129 = vector.load %arg8[%c0_45, %c0_46, %c0_47] : memref<2x1x32xf32, #tpu.memory_space<vmem>>, vector<1x1x32xf32>
    %130 = vector.shape_cast %129 : vector<1x1x32xf32> to vector<1x32xf32>
    %131 = vector.broadcast %130 : vector<1x32xf32> to vector<8x32xf32>
    %132 = arith.addf %128, %131 : vector<8x32xf32>
    %133 = arith.addf %132, %25 : vector<8x32xf32>
    %c0_48 = arith.constant 0 : index
    %c0_49 = arith.constant 0 : index
    %c0_50 = arith.constant 0 : index
    %134 = vector.load %arg9[%c0_48, %c0_49, %c0_50] : memref<2x1x32xf32, #tpu.memory_space<vmem>>, vector<1x1x32xf32>
    %135 = vector.shape_cast %134 : vector<1x1x32xf32> to vector<1x32xf32>
    %c0_51 = arith.constant 0 : index
    %c0_52 = arith.constant 0 : index
    %c0_53 = arith.constant 0 : index
    %136 = vector.load %arg10[%c0_51, %c0_52, %c0_53] : memref<2x1x32xf32, #tpu.memory_space<vmem>>, vector<1x1x32xf32>
    %137 = vector.shape_cast %136 : vector<1x1x32xf32> to vector<1x32xf32>
    %cst_54 = arith.constant dense<0.000000e+00> : vector<8xf32>
    %138 = vector.multi_reduction <add>, %133, %cst_54 [1] : vector<8x32xf32> to vector<8xf32>
    %139 = vector.shape_cast %138 : vector<8xf32> to vector<8x1xf32>
    %cst_55 = arith.constant 3.200000e+01 : f32
    %140 = vector.broadcast %cst_55 : f32 to vector<8x1xf32>
    %141 = arith.divf %139, %140 : vector<8x1xf32>
    %142 = vector.broadcast %141 : vector<8x1xf32> to vector<8x32xf32>
    %143 = arith.subf %133, %142 : vector<8x32xf32>
    %144 = arith.mulf %143, %143 : vector<8x32xf32>
    %cst_56 = arith.constant dense<0.000000e+00> : vector<8xf32>
    %145 = vector.multi_reduction <add>, %144, %cst_56 [1] : vector<8x32xf32> to vector<8xf32>
    %146 = vector.shape_cast %145 : vector<8xf32> to vector<8x1xf32>
    %cst_57 = arith.constant 3.200000e+01 : f32
    %147 = vector.broadcast %cst_57 : f32 to vector<8x1xf32>
    %148 = arith.divf %146, %147 : vector<8x1xf32>
    %cst_58 = arith.constant 9.99999996E-13 : f32
    %149 = vector.broadcast %cst_58 : f32 to vector<8x1xf32>
    %150 = arith.addf %148, %149 : vector<8x1xf32>
    %151 = math.rsqrt %150 : vector<8x1xf32>
    %152 = vector.broadcast %151 : vector<8x1xf32> to vector<8x32xf32>
    %153 = arith.mulf %143, %152 : vector<8x32xf32>
    %154 = vector.broadcast %135 : vector<1x32xf32> to vector<8x32xf32>
    %155 = arith.mulf %153, %154 : vector<8x32xf32>
    %156 = vector.broadcast %137 : vector<1x32xf32> to vector<8x32xf32>
    %157 = arith.addf %155, %156 : vector<8x32xf32>
    %c0_59 = arith.constant 0 : index
    %c0_60 = arith.constant 0 : index
    %c0_61 = arith.constant 0 : index
    %158 = vector.load %arg11[%c0_59, %c0_60, %c0_61] : memref<2x32x64xbf16, #tpu.memory_space<vmem>>, vector<1x32x64xbf16>
    %159 = vector.shape_cast %158 : vector<1x32x64xbf16> to vector<32x64xbf16>
    %c0_62 = arith.constant 0 : index
    %c0_63 = arith.constant 0 : index
    %c0_64 = arith.constant 0 : index
    %160 = vector.load %arg12[%c0_62, %c0_63, %c0_64] : memref<2x1x64xf32, #tpu.memory_space<vmem>>, vector<1x1x64xf32>
    %161 = vector.shape_cast %160 : vector<1x1x64xf32> to vector<1x64xf32>
    %162 = arith.truncf %157 : vector<8x32xf32> to vector<8x32xbf16>
    %cst_65 = arith.constant dense<0.000000e+00> : vector<8x64xf32>
    %163 = tpu.matmul %162, %159, %cst_65 {dimension_numbers = #tpu.dot_dimension_numbers<[1], [0], [0], [1], [0, 0, 1, 1], [], []>} : vector<8x32xbf16>, vector<32x64xbf16>, vector<8x64xf32> -> vector<8x64xf32>
    %164 = vector.broadcast %161 : vector<1x64xf32> to vector<8x64xf32>
    %165 = arith.addf %163, %164 : vector<8x64xf32>
    %166 = arith.mulf %165, %165 : vector<8x64xf32>
    %167 = arith.mulf %165, %166 : vector<8x64xf32>
    %cst_66 = arith.constant 4.471500e-02 : f32
    %168 = vector.broadcast %cst_66 : f32 to vector<8x64xf32>
    %169 = arith.mulf %168, %167 : vector<8x64xf32>
    %170 = arith.addf %165, %169 : vector<8x64xf32>
    %cst_67 = arith.constant 0.797884583 : f32
    %171 = vector.broadcast %cst_67 : f32 to vector<8x64xf32>
    %172 = arith.mulf %171, %170 : vector<8x64xf32>
    %173 = math.tanh %172 : vector<8x64xf32>
    %cst_68 = arith.constant 1.000000e+00 : f32
    %174 = vector.broadcast %cst_68 : f32 to vector<8x64xf32>
    %175 = arith.addf %174, %173 : vector<8x64xf32>
    %cst_69 = arith.constant 5.000000e-01 : f32
    %176 = vector.broadcast %cst_69 : f32 to vector<8x64xf32>
    %177 = arith.mulf %176, %175 : vector<8x64xf32>
    %178 = arith.mulf %165, %177 : vector<8x64xf32>
    %c0_70 = arith.constant 0 : index
    %c0_71 = arith.constant 0 : index
    %c0_72 = arith.constant 0 : index
    %179 = vector.load %arg13[%c0_70, %c0_71, %c0_72] : memref<2x64x32xbf16, #tpu.memory_space<vmem>>, vector<1x64x32xbf16>
    %180 = vector.shape_cast %179 : vector<1x64x32xbf16> to vector<64x32xbf16>
    %c0_73 = arith.constant 0 : index
    %c0_74 = arith.constant 0 : index
    %c0_75 = arith.constant 0 : index
    %181 = vector.load %arg14[%c0_73, %c0_74, %c0_75] : memref<2x1x32xf32, #tpu.memory_space<vmem>>, vector<1x1x32xf32>
    %182 = vector.shape_cast %181 : vector<1x1x32xf32> to vector<1x32xf32>
    %183 = arith.truncf %178 : vector<8x64xf32> to vector<8x64xbf16>
    %cst_76 = arith.constant dense<0.000000e+00> : vector<8x32xf32>
    %184 = tpu.matmul %183, %180, %cst_76 {dimension_numbers = #tpu.dot_dimension_numbers<[1], [0], [0], [1], [0, 0, 1, 1], [], []>} : vector<8x64xbf16>, vector<64x32xbf16>, vector<8x32xf32> -> vector<8x32xf32>
    %185 = vector.broadcast %182 : vector<1x32xf32> to vector<8x32xf32>
    %186 = arith.addf %184, %185 : vector<8x32xf32>
    %187 = arith.addf %186, %157 : vector<8x32xf32>
    %c0_77 = arith.constant 0 : index
    %c0_78 = arith.constant 0 : index
    %c0_79 = arith.constant 0 : index
    %188 = vector.load %arg15[%c0_77, %c0_78, %c0_79] : memref<2x1x32xf32, #tpu.memory_space<vmem>>, vector<1x1x32xf32>
    %189 = vector.shape_cast %188 : vector<1x1x32xf32> to vector<1x32xf32>
    %c0_80 = arith.constant 0 : index
    %c0_81 = arith.constant 0 : index
    %c0_82 = arith.constant 0 : index
    %190 = vector.load %arg16[%c0_80, %c0_81, %c0_82] : memref<2x1x32xf32, #tpu.memory_space<vmem>>, vector<1x1x32xf32>
    %191 = vector.shape_cast %190 : vector<1x1x32xf32> to vector<1x32xf32>
    %cst_83 = arith.constant dense<0.000000e+00> : vector<8xf32>
    %192 = vector.multi_reduction <add>, %187, %cst_83 [1] : vector<8x32xf32> to vector<8xf32>
    %193 = vector.shape_cast %192 : vector<8xf32> to vector<8x1xf32>
    %cst_84 = arith.constant 3.200000e+01 : f32
    %194 = vector.broadcast %cst_84 : f32 to vector<8x1xf32>
    %195 = arith.divf %193, %194 : vector<8x1xf32>
    %196 = vector.broadcast %195 : vector<8x1xf32> to vector<8x32xf32>
    %197 = arith.subf %187, %196 : vector<8x32xf32>
    %198 = arith.mulf %197, %197 : vector<8x32xf32>
    %cst_85 = arith.constant dense<0.000000e+00> : vector<8xf32>
    %199 = vector.multi_reduction <add>, %198, %cst_85 [1] : vector<8x32xf32> to vector<8xf32>
    %200 = vector.shape_cast %199 : vector<8xf32> to vector<8x1xf32>
    %cst_86 = arith.constant 3.200000e+01 : f32
    %201 = vector.broadcast %cst_86 : f32 to vector<8x1xf32>
    %202 = arith.divf %200, %201 : vector<8x1xf32>
    %cst_87 = arith.constant 9.99999996E-13 : f32
    %203 = vector.broadcast %cst_87 : f32 to vector<8x1xf32>
    %204 = arith.addf %202, %203 : vector<8x1xf32>
    %205 = math.rsqrt %204 : vector<8x1xf32>
    %206 = vector.broadcast %205 : vector<8x1xf32> to vector<8x32xf32>
    %207 = arith.mulf %197, %206 : vector<8x32xf32>
    %208 = vector.broadcast %189 : vector<1x32xf32> to vector<8x32xf32>
    %209 = arith.mulf %207, %208 : vector<8x32xf32>
    %210 = vector.broadcast %191 : vector<1x32xf32> to vector<8x32xf32>
    %211 = arith.addf %209, %210 : vector<8x32xf32>
    %c1 = arith.constant 1 : index
    %c0_88 = arith.constant 0 : index
    %c0_89 = arith.constant 0 : index
    %212 = vector.load %arg5[%c1, %c0_88, %c0_89] : memref<2x32x96xbf16, #tpu.memory_space<vmem>>, vector<1x32x96xbf16>
    %213 = vector.shape_cast %212 : vector<1x32x96xbf16> to vector<32x96xbf16>
    %c1_90 = arith.constant 1 : index
    %c0_91 = arith.constant 0 : index
    %c0_92 = arith.constant 0 : index
    %214 = vector.load %arg6[%c1_90, %c0_91, %c0_92] : memref<2x1x96xf32, #tpu.memory_space<vmem>>, vector<1x1x96xf32>
    %215 = vector.shape_cast %214 : vector<1x1x96xf32> to vector<1x96xf32>
    %216 = arith.truncf %211 : vector<8x32xf32> to vector<8x32xbf16>
    %cst_93 = arith.constant dense<0.000000e+00> : vector<8x96xf32>
    %217 = tpu.matmul %216, %213, %cst_93 {dimension_numbers = #tpu.dot_dimension_numbers<[1], [0], [0], [1], [0, 0, 1, 1], [], []>} : vector<8x32xbf16>, vector<32x96xbf16>, vector<8x96xf32> -> vector<8x96xf32>
    %218 = vector.broadcast %215 : vector<1x96xf32> to vector<8x96xf32>
    %219 = arith.addf %217, %218 : vector<8x96xf32>
    %c1_94 = arith.constant 1 : index
    %c0_95 = arith.constant 0 : index
    %c0_96 = arith.constant 0 : index
    %c0_97 = arith.constant 0 : index
    %220 = vector.load %arg7[%c1_94, %c0_95, %c0_96, %c0_97] : memref<2x4x8x32xbf16, #tpu.memory_space<vmem>>, vector<1x4x8x32xbf16>
    %221 = vector.shape_cast %220 : vector<1x4x8x32xbf16> to vector<4x8x32xbf16>
    %cst_98 = arith.constant 0.000000e+00 : f32
    %222 = vector.broadcast %cst_98 : f32 to vector<8x32xf32>
    %223 = vector.extract_strided_slice %219 {offsets = [0, 0], sizes = [8, 8], strides = [1, 1]} : vector<8x96xf32> to vector<8x8xf32>
    %224 = vector.extract_strided_slice %219 {offsets = [0, 32], sizes = [8, 8], strides = [1, 1]} : vector<8x96xf32> to vector<8x8xf32>
    %225 = vector.extract_strided_slice %219 {offsets = [0, 64], sizes = [8, 8], strides = [1, 1]} : vector<8x96xf32> to vector<8x8xf32>
    %226 = tpu.transpose %224, [1, 0] : vector<8x8xf32> -> vector<8x8xf32>
    %cst_99 = arith.constant dense<0.000000e+00> : vector<8x8xf32>
    %227 = tpu.matmul %223, %226, %cst_99 {dimension_numbers = #tpu.dot_dimension_numbers<[1], [0], [0], [1], [0, 0, 1, 1], [], []>} : vector<8x8xf32>, vector<8x8xf32>, vector<8x8xf32> -> vector<8x8xf32>
    %228 = vector.broadcast %3 : vector<1x8xf32> to vector<8x8xf32>
    %229 = arith.addf %227, %228 : vector<8x8xf32>
    %cst_100 = arith.constant dense<0xFF800000> : vector<8xf32>
    %230 = vector.multi_reduction <maximumf>, %229, %cst_100 [1] : vector<8x8xf32> to vector<8xf32>
    %231 = vector.shape_cast %230 : vector<8xf32> to vector<8x1xf32>
    %232 = vector.broadcast %231 : vector<8x1xf32> to vector<8x8xf32>
    %233 = arith.subf %229, %232 : vector<8x8xf32>
    %234 = math.exp %233 : vector<8x8xf32>
    %cst_101 = arith.constant dense<0.000000e+00> : vector<8xf32>
    %235 = vector.multi_reduction <add>, %234, %cst_101 [1] : vector<8x8xf32> to vector<8xf32>
    %236 = vector.shape_cast %235 : vector<8xf32> to vector<8x1xf32>
    %237 = tpu.reciprocal %236 {approx = true} : vector<8x1xf32> -> vector<8x1xf32>
    %238 = vector.broadcast %237 : vector<8x1xf32> to vector<8x8xf32>
    %239 = arith.mulf %234, %238 : vector<8x8xf32>
    %cst_102 = arith.constant dense<0.000000e+00> : vector<8x8xf32>
    %240 = tpu.matmul %239, %225, %cst_102 {dimension_numbers = #tpu.dot_dimension_numbers<[1], [0], [0], [1], [0, 0, 1, 1], [], []>} : vector<8x8xf32>, vector<8x8xf32>, vector<8x8xf32> -> vector<8x8xf32>
    %241 = arith.truncf %240 : vector<8x8xf32> to vector<8x8xbf16>
    %242 = vector.extract_strided_slice %221 {offsets = [0, 0, 0], sizes = [1, 8, 32], strides = [1, 1, 1]} : vector<4x8x32xbf16> to vector<1x8x32xbf16>
    %243 = vector.shape_cast %242 : vector<1x8x32xbf16> to vector<8x32xbf16>
    %cst_103 = arith.constant dense<0.000000e+00> : vector<8x32xf32>
    %244 = tpu.matmul %241, %243, %cst_103 {dimension_numbers = #tpu.dot_dimension_numbers<[1], [0], [0], [1], [0, 0, 1, 1], [], []>} : vector<8x8xbf16>, vector<8x32xbf16>, vector<8x32xf32> -> vector<8x32xf32>
    %245 = arith.addf %222, %244 : vector<8x32xf32>
    %246 = vector.extract_strided_slice %219 {offsets = [0, 8], sizes = [8, 8], strides = [1, 1]} : vector<8x96xf32> to vector<8x8xf32>
    %247 = vector.extract_strided_slice %219 {offsets = [0, 40], sizes = [8, 8], strides = [1, 1]} : vector<8x96xf32> to vector<8x8xf32>
    %248 = vector.extract_strided_slice %219 {offsets = [0, 72], sizes = [8, 8], strides = [1, 1]} : vector<8x96xf32> to vector<8x8xf32>
    %249 = tpu.transpose %247, [1, 0] : vector<8x8xf32> -> vector<8x8xf32>
    %cst_104 = arith.constant dense<0.000000e+00> : vector<8x8xf32>
    %250 = tpu.matmul %246, %249, %cst_104 {dimension_numbers = #tpu.dot_dimension_numbers<[1], [0], [0], [1], [0, 0, 1, 1], [], []>} : vector<8x8xf32>, vector<8x8xf32>, vector<8x8xf32> -> vector<8x8xf32>
    %251 = vector.broadcast %3 : vector<1x8xf32> to vector<8x8xf32>
    %252 = arith.addf %250, %251 : vector<8x8xf32>
    %cst_105 = arith.constant dense<0xFF800000> : vector<8xf32>
    %253 = vector.multi_reduction <maximumf>, %252, %cst_105 [1] : vector<8x8xf32> to vector<8xf32>
    %254 = vector.shape_cast %253 : vector<8xf32> to vector<8x1xf32>
    %255 = vector.broadcast %254 : vector<8x1xf32> to vector<8x8xf32>
    %256 = arith.subf %252, %255 : vector<8x8xf32>
    %257 = math.exp %256 : vector<8x8xf32>
    %cst_106 = arith.constant dense<0.000000e+00> : vector<8xf32>
    %258 = vector.multi_reduction <add>, %257, %cst_106 [1] : vector<8x8xf32> to vector<8xf32>
    %259 = vector.shape_cast %258 : vector<8xf32> to vector<8x1xf32>
    %260 = tpu.reciprocal %259 {approx = true} : vector<8x1xf32> -> vector<8x1xf32>
    %261 = vector.broadcast %260 : vector<8x1xf32> to vector<8x8xf32>
    %262 = arith.mulf %257, %261 : vector<8x8xf32>
    %cst_107 = arith.constant dense<0.000000e+00> : vector<8x8xf32>
    %263 = tpu.matmul %262, %248, %cst_107 {dimension_numbers = #tpu.dot_dimension_numbers<[1], [0], [0], [1], [0, 0, 1, 1], [], []>} : vector<8x8xf32>, vector<8x8xf32>, vector<8x8xf32> -> vector<8x8xf32>
    %264 = arith.truncf %263 : vector<8x8xf32> to vector<8x8xbf16>
    %265 = vector.extract_strided_slice %221 {offsets = [1, 0, 0], sizes = [1, 8, 32], strides = [1, 1, 1]} : vector<4x8x32xbf16> to vector<1x8x32xbf16>
    %266 = vector.shape_cast %265 : vector<1x8x32xbf16> to vector<8x32xbf16>
    %cst_108 = arith.constant dense<0.000000e+00> : vector<8x32xf32>
    %267 = tpu.matmul %264, %266, %cst_108 {dimension_numbers = #tpu.dot_dimension_numbers<[1], [0], [0], [1], [0, 0, 1, 1], [], []>} : vector<8x8xbf16>, vector<8x32xbf16>, vector<8x32xf32> -> vector<8x32xf32>
    %268 = arith.addf %245, %267 : vector<8x32xf32>
    %269 = vector.extract_strided_slice %219 {offsets = [0, 16], sizes = [8, 8], strides = [1, 1]} : vector<8x96xf32> to vector<8x8xf32>
    %270 = vector.extract_strided_slice %219 {offsets = [0, 48], sizes = [8, 8], strides = [1, 1]} : vector<8x96xf32> to vector<8x8xf32>
    %271 = vector.extract_strided_slice %219 {offsets = [0, 80], sizes = [8, 8], strides = [1, 1]} : vector<8x96xf32> to vector<8x8xf32>
    %272 = tpu.transpose %270, [1, 0] : vector<8x8xf32> -> vector<8x8xf32>
    %cst_109 = arith.constant dense<0.000000e+00> : vector<8x8xf32>
    %273 = tpu.matmul %269, %272, %cst_109 {dimension_numbers = #tpu.dot_dimension_numbers<[1], [0], [0], [1], [0, 0, 1, 1], [], []>} : vector<8x8xf32>, vector<8x8xf32>, vector<8x8xf32> -> vector<8x8xf32>
    %274 = vector.broadcast %3 : vector<1x8xf32> to vector<8x8xf32>
    %275 = arith.addf %273, %274 : vector<8x8xf32>
    %cst_110 = arith.constant dense<0xFF800000> : vector<8xf32>
    %276 = vector.multi_reduction <maximumf>, %275, %cst_110 [1] : vector<8x8xf32> to vector<8xf32>
    %277 = vector.shape_cast %276 : vector<8xf32> to vector<8x1xf32>
    %278 = vector.broadcast %277 : vector<8x1xf32> to vector<8x8xf32>
    %279 = arith.subf %275, %278 : vector<8x8xf32>
    %280 = math.exp %279 : vector<8x8xf32>
    %cst_111 = arith.constant dense<0.000000e+00> : vector<8xf32>
    %281 = vector.multi_reduction <add>, %280, %cst_111 [1] : vector<8x8xf32> to vector<8xf32>
    %282 = vector.shape_cast %281 : vector<8xf32> to vector<8x1xf32>
    %283 = tpu.reciprocal %282 {approx = true} : vector<8x1xf32> -> vector<8x1xf32>
    %284 = vector.broadcast %283 : vector<8x1xf32> to vector<8x8xf32>
    %285 = arith.mulf %280, %284 : vector<8x8xf32>
    %cst_112 = arith.constant dense<0.000000e+00> : vector<8x8xf32>
    %286 = tpu.matmul %285, %271, %cst_112 {dimension_numbers = #tpu.dot_dimension_numbers<[1], [0], [0], [1], [0, 0, 1, 1], [], []>} : vector<8x8xf32>, vector<8x8xf32>, vector<8x8xf32> -> vector<8x8xf32>
    %287 = arith.truncf %286 : vector<8x8xf32> to vector<8x8xbf16>
    %288 = vector.extract_strided_slice %221 {offsets = [2, 0, 0], sizes = [1, 8, 32], strides = [1, 1, 1]} : vector<4x8x32xbf16> to vector<1x8x32xbf16>
    %289 = vector.shape_cast %288 : vector<1x8x32xbf16> to vector<8x32xbf16>
    %cst_113 = arith.constant dense<0.000000e+00> : vector<8x32xf32>
    %290 = tpu.matmul %287, %289, %cst_113 {dimension_numbers = #tpu.dot_dimension_numbers<[1], [0], [0], [1], [0, 0, 1, 1], [], []>} : vector<8x8xbf16>, vector<8x32xbf16>, vector<8x32xf32> -> vector<8x32xf32>
    %291 = arith.addf %268, %290 : vector<8x32xf32>
    %292 = vector.extract_strided_slice %219 {offsets = [0, 24], sizes = [8, 8], strides = [1, 1]} : vector<8x96xf32> to vector<8x8xf32>
    %293 = vector.extract_strided_slice %219 {offsets = [0, 56], sizes = [8, 8], strides = [1, 1]} : vector<8x96xf32> to vector<8x8xf32>
    %294 = vector.extract_strided_slice %219 {offsets = [0, 88], sizes = [8, 8], strides = [1, 1]} : vector<8x96xf32> to vector<8x8xf32>
    %295 = tpu.transpose %293, [1, 0] : vector<8x8xf32> -> vector<8x8xf32>
    %cst_114 = arith.constant dense<0.000000e+00> : vector<8x8xf32>
    %296 = tpu.matmul %292, %295, %cst_114 {dimension_numbers = #tpu.dot_dimension_numbers<[1], [0], [0], [1], [0, 0, 1, 1], [], []>} : vector<8x8xf32>, vector<8x8xf32>, vector<8x8xf32> -> vector<8x8xf32>
    %297 = vector.broadcast %3 : vector<1x8xf32> to vector<8x8xf32>
    %298 = arith.addf %296, %297 : vector<8x8xf32>
    %cst_115 = arith.constant dense<0xFF800000> : vector<8xf32>
    %299 = vector.multi_reduction <maximumf>, %298, %cst_115 [1] : vector<8x8xf32> to vector<8xf32>
    %300 = vector.shape_cast %299 : vector<8xf32> to vector<8x1xf32>
    %301 = vector.broadcast %300 : vector<8x1xf32> to vector<8x8xf32>
    %302 = arith.subf %298, %301 : vector<8x8xf32>
    %303 = math.exp %302 : vector<8x8xf32>
    %cst_116 = arith.constant dense<0.000000e+00> : vector<8xf32>
    %304 = vector.multi_reduction <add>, %303, %cst_116 [1] : vector<8x8xf32> to vector<8xf32>
    %305 = vector.shape_cast %304 : vector<8xf32> to vector<8x1xf32>
    %306 = tpu.reciprocal %305 {approx = true} : vector<8x1xf32> -> vector<8x1xf32>
    %307 = vector.broadcast %306 : vector<8x1xf32> to vector<8x8xf32>
    %308 = arith.mulf %303, %307 : vector<8x8xf32>
    %cst_117 = arith.constant dense<0.000000e+00> : vector<8x8xf32>
    %309 = tpu.matmul %308, %294, %cst_117 {dimension_numbers = #tpu.dot_dimension_numbers<[1], [0], [0], [1], [0, 0, 1, 1], [], []>} : vector<8x8xf32>, vector<8x8xf32>, vector<8x8xf32> -> vector<8x8xf32>
    %310 = arith.truncf %309 : vector<8x8xf32> to vector<8x8xbf16>
    %311 = vector.extract_strided_slice %221 {offsets = [3, 0, 0], sizes = [1, 8, 32], strides = [1, 1, 1]} : vector<4x8x32xbf16> to vector<1x8x32xbf16>
    %312 = vector.shape_cast %311 : vector<1x8x32xbf16> to vector<8x32xbf16>
    %cst_118 = arith.constant dense<0.000000e+00> : vector<8x32xf32>
    %313 = tpu.matmul %310, %312, %cst_118 {dimension_numbers = #tpu.dot_dimension_numbers<[1], [0], [0], [1], [0, 0, 1, 1], [], []>} : vector<8x8xbf16>, vector<8x32xbf16>, vector<8x32xf32> -> vector<8x32xf32>
    %314 = arith.addf %291, %313 : vector<8x32xf32>
    %c1_119 = arith.constant 1 : index
    %c0_120 = arith.constant 0 : index
    %c0_121 = arith.constant 0 : index
    %315 = vector.load %arg8[%c1_119, %c0_120, %c0_121] : memref<2x1x32xf32, #tpu.memory_space<vmem>>, vector<1x1x32xf32>
    %316 = vector.shape_cast %315 : vector<1x1x32xf32> to vector<1x32xf32>
    %317 = vector.broadcast %316 : vector<1x32xf32> to vector<8x32xf32>
    %318 = arith.addf %314, %317 : vector<8x32xf32>
    %319 = arith.addf %318, %211 : vector<8x32xf32>
    %c1_122 = arith.constant 1 : index
    %c0_123 = arith.constant 0 : index
    %c0_124 = arith.constant 0 : index
    %320 = vector.load %arg9[%c1_122, %c0_123, %c0_124] : memref<2x1x32xf32, #tpu.memory_space<vmem>>, vector<1x1x32xf32>
    %321 = vector.shape_cast %320 : vector<1x1x32xf32> to vector<1x32xf32>
    %c1_125 = arith.constant 1 : index
    %c0_126 = arith.constant 0 : index
    %c0_127 = arith.constant 0 : index
    %322 = vector.load %arg10[%c1_125, %c0_126, %c0_127] : memref<2x1x32xf32, #tpu.memory_space<vmem>>, vector<1x1x32xf32>
    %323 = vector.shape_cast %322 : vector<1x1x32xf32> to vector<1x32xf32>
    %cst_128 = arith.constant dense<0.000000e+00> : vector<8xf32>
    %324 = vector.multi_reduction <add>, %319, %cst_128 [1] : vector<8x32xf32> to vector<8xf32>
    %325 = vector.shape_cast %324 : vector<8xf32> to vector<8x1xf32>
    %cst_129 = arith.constant 3.200000e+01 : f32
    %326 = vector.broadcast %cst_129 : f32 to vector<8x1xf32>
    %327 = arith.divf %325, %326 : vector<8x1xf32>
    %328 = vector.broadcast %327 : vector<8x1xf32> to vector<8x32xf32>
    %329 = arith.subf %319, %328 : vector<8x32xf32>
    %330 = arith.mulf %329, %329 : vector<8x32xf32>
    %cst_130 = arith.constant dense<0.000000e+00> : vector<8xf32>
    %331 = vector.multi_reduction <add>, %330, %cst_130 [1] : vector<8x32xf32> to vector<8xf32>
    %332 = vector.shape_cast %331 : vector<8xf32> to vector<8x1xf32>
    %cst_131 = arith.constant 3.200000e+01 : f32
    %333 = vector.broadcast %cst_131 : f32 to vector<8x1xf32>
    %334 = arith.divf %332, %333 : vector<8x1xf32>
    %cst_132 = arith.constant 9.99999996E-13 : f32
    %335 = vector.broadcast %cst_132 : f32 to vector<8x1xf32>
    %336 = arith.addf %334, %335 : vector<8x1xf32>
    %337 = math.rsqrt %336 : vector<8x1xf32>
    %338 = vector.broadcast %337 : vector<8x1xf32> to vector<8x32xf32>
    %339 = arith.mulf %329, %338 : vector<8x32xf32>
    %340 = vector.broadcast %321 : vector<1x32xf32> to vector<8x32xf32>
    %341 = arith.mulf %339, %340 : vector<8x32xf32>
    %342 = vector.broadcast %323 : vector<1x32xf32> to vector<8x32xf32>
    %343 = arith.addf %341, %342 : vector<8x32xf32>
    %c1_133 = arith.constant 1 : index
    %c0_134 = arith.constant 0 : index
    %c0_135 = arith.constant 0 : index
    %344 = vector.load %arg11[%c1_133, %c0_134, %c0_135] : memref<2x32x64xbf16, #tpu.memory_space<vmem>>, vector<1x32x64xbf16>
    %345 = vector.shape_cast %344 : vector<1x32x64xbf16> to vector<32x64xbf16>
    %c1_136 = arith.constant 1 : index
    %c0_137 = arith.constant 0 : index
    %c0_138 = arith.constant 0 : index
    %346 = vector.load %arg12[%c1_136, %c0_137, %c0_138] : memref<2x1x64xf32, #tpu.memory_space<vmem>>, vector<1x1x64xf32>
    %347 = vector.shape_cast %346 : vector<1x1x64xf32> to vector<1x64xf32>
    %348 = arith.truncf %343 : vector<8x32xf32> to vector<8x32xbf16>
    %cst_139 = arith.constant dense<0.000000e+00> : vector<8x64xf32>
    %349 = tpu.matmul %348, %345, %cst_139 {dimension_numbers = #tpu.dot_dimension_numbers<[1], [0], [0], [1], [0, 0, 1, 1], [], []>} : vector<8x32xbf16>, vector<32x64xbf16>, vector<8x64xf32> -> vector<8x64xf32>
    %350 = vector.broadcast %347 : vector<1x64xf32> to vector<8x64xf32>
    %351 = arith.addf %349, %350 : vector<8x64xf32>
    %352 = arith.mulf %351, %351 : vector<8x64xf32>
    %353 = arith.mulf %351, %352 : vector<8x64xf32>
    %cst_140 = arith.constant 4.471500e-02 : f32
    %354 = vector.broadcast %cst_140 : f32 to vector<8x64xf32>
    %355 = arith.mulf %354, %353 : vector<8x64xf32>
    %356 = arith.addf %351, %355 : vector<8x64xf32>
    %cst_141 = arith.constant 0.797884583 : f32
    %357 = vector.broadcast %cst_141 : f32 to vector<8x64xf32>
    %358 = arith.mulf %357, %356 : vector<8x64xf32>
    %359 = math.tanh %358 : vector<8x64xf32>
    %cst_142 = arith.constant 1.000000e+00 : f32
    %360 = vector.broadcast %cst_142 : f32 to vector<8x64xf32>
    %361 = arith.addf %360, %359 : vector<8x64xf32>
    %cst_143 = arith.constant 5.000000e-01 : f32
    %362 = vector.broadcast %cst_143 : f32 to vector<8x64xf32>
    %363 = arith.mulf %362, %361 : vector<8x64xf32>
    %364 = arith.mulf %351, %363 : vector<8x64xf32>
    %c1_144 = arith.constant 1 : index
    %c0_145 = arith.constant 0 : index
    %c0_146 = arith.constant 0 : index
    %365 = vector.load %arg13[%c1_144, %c0_145, %c0_146] : memref<2x64x32xbf16, #tpu.memory_space<vmem>>, vector<1x64x32xbf16>
    %366 = vector.shape_cast %365 : vector<1x64x32xbf16> to vector<64x32xbf16>
    %c1_147 = arith.constant 1 : index
    %c0_148 = arith.constant 0 : index
    %c0_149 = arith.constant 0 : index
    %367 = vector.load %arg14[%c1_147, %c0_148, %c0_149] : memref<2x1x32xf32, #tpu.memory_space<vmem>>, vector<1x1x32xf32>
    %368 = vector.shape_cast %367 : vector<1x1x32xf32> to vector<1x32xf32>
    %369 = arith.truncf %364 : vector<8x64xf32> to vector<8x64xbf16>
    %cst_150 = arith.constant dense<0.000000e+00> : vector<8x32xf32>
    %370 = tpu.matmul %369, %366, %cst_150 {dimension_numbers = #tpu.dot_dimension_numbers<[1], [0], [0], [1], [0, 0, 1, 1], [], []>} : vector<8x64xbf16>, vector<64x32xbf16>, vector<8x32xf32> -> vector<8x32xf32>
    %371 = vector.broadcast %368 : vector<1x32xf32> to vector<8x32xf32>
    %372 = arith.addf %370, %371 : vector<8x32xf32>
    %373 = arith.addf %372, %343 : vector<8x32xf32>
    %c1_151 = arith.constant 1 : index
    %c0_152 = arith.constant 0 : index
    %c0_153 = arith.constant 0 : index
    %374 = vector.load %arg15[%c1_151, %c0_152, %c0_153] : memref<2x1x32xf32, #tpu.memory_space<vmem>>, vector<1x1x32xf32>
    %375 = vector.shape_cast %374 : vector<1x1x32xf32> to vector<1x32xf32>
    %c1_154 = arith.constant 1 : index
    %c0_155 = arith.constant 0 : index
    %c0_156 = arith.constant 0 : index
    %376 = vector.load %arg16[%c1_154, %c0_155, %c0_156] : memref<2x1x32xf32, #tpu.memory_space<vmem>>, vector<1x1x32xf32>
    %377 = vector.shape_cast %376 : vector<1x1x32xf32> to vector<1x32xf32>
    %cst_157 = arith.constant dense<0.000000e+00> : vector<8xf32>
    %378 = vector.multi_reduction <add>, %373, %cst_157 [1] : vector<8x32xf32> to vector<8xf32>
    %379 = vector.shape_cast %378 : vector<8xf32> to vector<8x1xf32>
    %cst_158 = arith.constant 3.200000e+01 : f32
    %380 = vector.broadcast %cst_158 : f32 to vector<8x1xf32>
    %381 = arith.divf %379, %380 : vector<8x1xf32>
    %382 = vector.broadcast %381 : vector<8x1xf32> to vector<8x32xf32>
    %383 = arith.subf %373, %382 : vector<8x32xf32>
    %384 = arith.mulf %383, %383 : vector<8x32xf32>
    %cst_159 = arith.constant dense<0.000000e+00> : vector<8xf32>
    %385 = vector.multi_reduction <add>, %384, %cst_159 [1] : vector<8x32xf32> to vector<8xf32>
    %386 = vector.shape_cast %385 : vector<8xf32> to vector<8x1xf32>
    %cst_160 = arith.constant 3.200000e+01 : f32
    %387 = vector.broadcast %cst_160 : f32 to vector<8x1xf32>
    %388 = arith.divf %386, %387 : vector<8x1xf32>
    %cst_161 = arith.constant 9.99999996E-13 : f32
    %389 = vector.broadcast %cst_161 : f32 to vector<8x1xf32>
    %390 = arith.addf %388, %389 : vector<8x1xf32>
    %391 = math.rsqrt %390 : vector<8x1xf32>
    %392 = vector.broadcast %391 : vector<8x1xf32> to vector<8x32xf32>
    %393 = arith.mulf %383, %392 : vector<8x32xf32>
    %394 = vector.broadcast %375 : vector<1x32xf32> to vector<8x32xf32>
    %395 = arith.mulf %393, %394 : vector<8x32xf32>
    %396 = vector.broadcast %377 : vector<1x32xf32> to vector<8x32xf32>
    %397 = arith.addf %395, %396 : vector<8x32xf32>
    %398 = vector.extract_strided_slice %397 {offsets = [0, 0], sizes = [1, 32], strides = [1, 1]} : vector<8x32xf32> to vector<1x32xf32>
    %c0_162 = arith.constant 0 : index
    %c0_163 = arith.constant 0 : index
    %c0_164 = arith.constant 0 : index
    %399 = vector.load %arg19[%c0_162, %c0_163, %c0_164] : memref<1x1x32xf32, #tpu.memory_space<vmem>>, vector<1x1x32xf32>
    %400 = vector.shape_cast %399 : vector<1x1x32xf32> to vector<1x32xf32>
    %401 = vector.shape_cast %398 : vector<1x32xf32> to vector<1x1x32xf32>
    tpu.vector_store %arg19[%c0_162, %c0_163, %c0_164], %401 {strides = array<i32>} : memref<1x1x32xf32, #tpu.memory_space<vmem>>, vector<1x1x32xf32>,
    %c0_165 = arith.constant 0 : index
    %c0_166 = arith.constant 0 : index
    %402 = vector.load %arg17[%c0_165, %c0_166] : memref<32x32xbf16, #tpu.memory_space<vmem>>, vector<32x32xbf16>
    %c0_167 = arith.constant 0 : index
    %c0_168 = arith.constant 0 : index
    %403 = vector.load %arg18[%c0_167, %c0_168] : memref<1x32xf32, #tpu.memory_space<vmem>>, vector<1x32xf32>
    %404 = arith.truncf %398 : vector<1x32xf32> to vector<1x32xbf16>
    %cst_169 = arith.constant dense<0.000000e+00> : vector<1x32xf32>
    %405 = tpu.matmul %404, %402, %cst_169 {dimension_numbers = #tpu.dot_dimension_numbers<[1], [0], [0], [1], [0, 0, 1, 1], [], []>} : vector<1x32xbf16>, vector<32x32xbf16>, vector<1x32xf32> -> vector<1x32xf32>
    %406 = arith.addf %405, %403 : vector<1x32xf32>
    %407 = math.tanh %406 : vector<1x32xf32>
    %c0_170 = arith.constant 0 : index
    %c0_171 = arith.constant 0 : index
    %c0_172 = arith.constant 0 : index
    %408 = vector.load %arg20[%c0_170, %c0_171, %c0_172] : memref<1x1x32xf32, #tpu.memory_space<vmem>>, vector<1x1x32xf32>
    %409 = vector.shape_cast %408 : vector<1x1x32xf32> to vector<1x32xf32>
    %410 = vector.shape_cast %407 : vector<1x32xf32> to vector<1x1x32xf32>
    tpu.vector_store %arg20[%c0_170, %c0_171, %c0_172], %410 {strides = array<i32>} : memref<1x1x32xf32, #tpu.memory_space<vmem>>, vector<1x1x32xf32>,
    return
  }
  func.func @transform_0(%arg0: i32) -> (i32, i32, i32) {
    %c0_i32 = arith.constant 0 : i32
    %c0_i32_0 = arith.constant 0 : i32
    %c0_i32_1 = arith.constant 0 : i32
    return %arg0, %c0_i32, %c0_i32_0 : i32, i32, i32
  }
  func.func @transform_1(%arg0: i32) -> (i32, i32, i32) {
    %c0_i32 = arith.constant 0 : i32
    %c0_i32_0 = arith.constant 0 : i32
    %c0_i32_1 = arith.constant 0 : i32
    return %arg0, %c0_i32, %c0_i32_0 : i32, i32, i32
  }
  func.func @transform_2(%arg0: i32) -> (i32, i32) {
    %c0_i32 = arith.constant 0 : i32
    %c0_i32_0 = arith.constant 0 : i32
    %c0_i32_1 = arith.constant 0 : i32
    return %c0_i32, %c0_i32_0 : i32, i32
  }
  func.func @transform_3(%arg0: i32) -> (i32, i32) {
    %c0_i32 = arith.constant 0 : i32
    %c0_i32_0 = arith.constant 0 : i32
    %c0_i32_1 = arith.constant 0 : i32
    return %c0_i32, %c0_i32_0 : i32, i32
  }
  func.func @transform_4(%arg0: i32) -> (i32, i32, i32) {
    %c0_i32 = arith.constant 0 : i32
    %c0_i32_0 = arith.constant 0 : i32
    %c0_i32_1 = arith.constant 0 : i32
    %c0_i32_2 = arith.constant 0 : i32
    return %c0_i32, %c0_i32_0, %c0_i32_1 : i32, i32, i32
  }
  func.func @transform_5(%arg0: i32) -> (i32, i32, i32) {
    %c0_i32 = arith.constant 0 : i32
    %c0_i32_0 = arith.constant 0 : i32
    %c0_i32_1 = arith.constant 0 : i32
    %c0_i32_2 = arith.constant 0 : i32
    return %c0_i32, %c0_i32_0, %c0_i32_1 : i32, i32, i32
  }
  func.func @transform_6(%arg0: i32) -> (i32, i32, i32, i32) {
    %c0_i32 = arith.constant 0 : i32
    %c0_i32_0 = arith.constant 0 : i32
    %c0_i32_1 = arith.constant 0 : i32
    %c0_i32_2 = arith.constant 0 : i32
    %c0_i32_3 = arith.constant 0 : i32
    return %c0_i32, %c0_i32_0, %c0_i32_1, %c0_i32_2 : i32, i32, i32, i32
  }
  func.func @transform_7(%arg0: i32) -> (i32, i32, i32) {
    %c0_i32 = arith.constant 0 : i32
    %c0_i32_0 = arith.constant 0 : i32
    %c0_i32_1 = arith.constant 0 : i32
    %c0_i32_2 = arith.constant 0 : i32
    return %c0_i32, %c0_i32_0, %c0_i32_1 : i32, i32, i32
  }
  func.func @transform_8(%arg0: i32) -> (i32, i32, i32) {
    %c0_i32 = arith.constant 0 : i32
    %c0_i32_0 = arith.constant 0 : i32
    %c0_i32_1 = arith.constant 0 : i32
    %c0_i32_2 = arith.constant 0 : i32
    return %c0_i32, %c0_i32_0, %c0_i32_1 : i32, i32, i32
  }
  func.func @transform_9(%arg0: i32) -> (i32, i32, i32) {
    %c0_i32 = arith.constant 0 : i32
    %c0_i32_0 = arith.constant 0 : i32
    %c0_i32_1 = arith.constant 0 : i32
    %c0_i32_2 = arith.constant 0 : i32
    return %c0_i32, %c0_i32_0, %c0_i32_1 : i32, i32, i32
  }
  func.func @transform_10(%arg0: i32) -> (i32, i32, i32) {
    %c0_i32 = arith.constant 0 : i32
    %c0_i32_0 = arith.constant 0 : i32
    %c0_i32_1 = arith.constant 0 : i32
    %c0_i32_2 = arith.constant 0 : i32
    return %c0_i32, %c0_i32_0, %c0_i32_1 : i32, i32, i32
  }
  func.func @transform_11(%arg0: i32) -> (i32, i32, i32) {
    %c0_i32 = arith.constant 0 : i32
    %c0_i32_0 = arith.constant 0 : i32
    %c0_i32_1 = arith.constant 0 : i32
    %c0_i32_2 = arith.constant 0 : i32
    return %c0_i32, %c0_i32_0, %c0_i32_1 : i32, i32, i32
  }
  func.func @transform_12(%arg0: i32) -> (i32, i32, i32) {
    %c0_i32 = arith.constant 0 : i32
    %c0_i32_0 = arith.constant 0 : i32
    %c0_i32_1 = arith.constant 0 : i32
    %c0_i32_2 = arith.constant 0 : i32
    return %c0_i32, %c0_i32_0, %c0_i32_1 : i32, i32, i32
  }
  func.func @transform_13(%arg0: i32) -> (i32, i32, i32) {
    %c0_i32 = arith.constant 0 : i32
    %c0_i32_0 = arith.constant 0 : i32
    %c0_i32_1 = arith.constant 0 : i32
    %c0_i32_2 = arith.constant 0 : i32
    return %c0_i32, %c0_i32_0, %c0_i32_1 : i32, i32, i32
  }
  func.func @transform_14(%arg0: i32) -> (i32, i32, i32) {
    %c0_i32 = arith.constant 0 : i32
    %c0_i32_0 = arith.constant 0 : i32
    %c0_i32_1 = arith.constant 0 : i32
    %c0_i32_2 = arith.constant 0 : i32
    return %c0_i32, %c0_i32_0, %c0_i32_1 : i32, i32, i32
  }
  func.func @transform_15(%arg0: i32) -> (i32, i32, i32) {
    %c0_i32 = arith.constant 0 : i32
    %c0_i32_0 = arith.constant 0 : i32
    %c0_i32_1 = arith.constant 0 : i32
    %c0_i32_2 = arith.constant 0 : i32
    return %c0_i32, %c0_i32_0, %c0_i32_1 : i32, i32, i32
  }
  func.func @transform_16(%arg0: i32) -> (i32, i32) {
    %c0_i32 = arith.constant 0 : i32
    %c0_i32_0 = arith.constant 0 : i32
    %c0_i32_1 = arith.constant 0 : i32
    return %c0_i32, %c0_i32_0 : i32, i32
  }
  func.func @transform_17(%arg0: i32) -> (i32, i32) {
    %c0_i32 = arith.constant 0 : i32
    %c0_i32_0 = arith.constant 0 : i32
    %c0_i32_1 = arith.constant 0 : i32
    return %c0_i32, %c0_i32_0 : i32, i32
  }
  func.func @transform_18(%arg0: i32) -> (i32, i32, i32) {
    %c0_i32 = arith.constant 0 : i32
    %c0_i32_0 = arith.constant 0 : i32
    %c0_i32_1 = arith.constant 0 : i32
    return %arg0, %c0_i32, %c0_i32_0 : i32, i32, i32
  }
  func.func @transform_19(%arg0: i32) -> (i32, i32, i32) {
    %c0_i32 = arith.constant 0 : i32
    %c0_i32_0 = arith.constant 0 : i32
    %c0_i32_1 = arith.constant 0 : i32
    return %arg0, %c0_i32, %c0_i32_0 : i32, i32, i32
  }
}

</mosaic_0001>

<bundles_post_ra>
// kernel: _bert_reps.1
= control target key start
LH: loop header
LB: loop body
LE: loop exit
PB: predicated region body
PF: predicated region fallthrough
CT: control target
= control target key end

     0   :  { %s4392_s0 = inlined_call_operand.vmem [shape: f32[2,8,32], index: 0, kind: input, shape index: {}]   ;;  %s4393_s1 = inlined_call_operand.vmem [shape: f32[2,1,8], index: 1, kind: input, shape index: {}]   ;;  %s4394_s2 = inlined_call_operand.vmem [shape: f32[1,32], index: 2, kind: input, shape index: {}]   ;;  %s4395_s3 = inlined_call_operand.vmem [shape: f32[1,32], index: 3, kind: input, shape index: {}]   ;;  %s4396_s4 = inlined_call_operand.vmem [shape: bf16[2,32,96], index: 4, kind: input, shape index: {}]   ;;  %s4397_s5 = inlined_call_operand.vmem [shape: f32[2,1,96], index: 5, kind: input, shape index: {}]   ;;  %s4398_s6 = inlined_call_operand.vmem [shape: bf16[2,4,8,32], index: 6, kind: input, shape index: {}]   ;;  %s4399_s7 = inlined_call_operand.vmem [shape: f32[2,1,32], index: 7, kind: input, shape index: {}]   ;;  %s4400_s8 = inlined_call_operand.vmem [shape: f32[2,1,32], index: 8, kind: input, shape index: {}]   ;;  %s4401_s9 = inlined_call_operand.vmem [shape: f32[2,1,32], index: 9, kind: input, shape index: {}]   ;;  %s4402_s10 = inlined_call_operand.vmem [shape: bf16[2,32,64], index: 10, kind: input, shape index: {}]   ;;  %s4403_s11 = inlined_call_operand.vmem [shape: f32[2,1,64], index: 11, kind: input, shape index: {}]   ;;  %s4404_s12 = inlined_call_operand.vmem [shape: bf16[2,64,32], index: 12, kind: input, shape index: {}]   ;;  %s4405_s13 = inlined_call_operand.vmem [shape: f32[2,1,32], index: 13, kind: input, shape index: {}]   ;;  %s4406_s14 = inlined_call_operand.vmem [shape: f32[2,1,32], index: 14, kind: input, shape index: {}]   ;;  %s4407_s15 = inlined_call_operand.vmem [shape: f32[2,1,32], index: 15, kind: input, shape index: {}]   ;;  %s4408_s16 = inlined_call_operand.vmem [shape: bf16[32,32], index: 16, kind: input, shape index: {}]   ;;  %s4409_s17 = inlined_call_operand.vmem [shape: f32[1,32], index: 17, kind: input, shape index: {}]   ;;  %s4410_s18 = inlined_call_operand.hbm [shape: f32[2,1,32], index: 18, kind: output, shape index: {0}]   ;;  %s4411_s19 = inlined_call_operand.hbm [shape: f32[2,1,32], index: 19, kind: output, shape index: {1}]  }
   0x1   :  { %4425 = sst [smem:[#allocation11_spill]] %s4392_s0 }
   0x2   :  { %4426 = sst [smem:[#allocation12_spill]] %s4393_s1 }
   0x3   :  { %4427 = sst [smem:[#allocation13_spill]] %s4394_s2 }
   0x4   :  { %4428 = sst [smem:[#allocation14_spill]] %s4395_s3 }
   0x5   :  { %4429 = sst [smem:[#allocation15_spill]] %s4396_s4 }
   0x6   :  { %4430 = sst [smem:[#allocation16_spill]] %s4397_s5 }
   0x7   :  { %4431 = sst [smem:[#allocation17_spill]] %s4398_s6 }
   0x8   :  { %25 = vsyncpa [#allocation3], 0 }
   0x9   :  { %27 = vsyncpa [#allocation3 + $0x1], 0 }
   0xa   :  { %28 = vsyncpa [#allocation5], 0 }
   0xb   :  { %30 = vsyncpa [#allocation5 + $0x1], 0  ;;  %s3869_s0 = smov 0   ;;  %s3871_s30 = smov 0  }
   0xc   :  { %s3873_s20 = smov 0   ;;  %s3875_s21 = smov 0  }
   0xd LB: > { %4432 = sst [smem:[#allocation8_spill]] %s3748_s20  ;;  %s3890_s1 = sadd.s32 4294967295, %s3752_s21   ;;  %s3752_s21 = sphi %s3875_s21, %s4454_s21   ;;  %s3748_s20 = sphi %s3873_s20, %s4456_s20   ;;  %s3744_s30 = sphi %s3871_s30, %s4458_s30   ;;  %s3740_s0 = sphi %s3869_s0, %s4457_s0  }
   0xe   : > { %s3157_s22 = sadd.s32 4294967294, %s3752_s21   ;;  %s3894_s2 = sadd.s32 1, %s3752_s21  }
   0xf   : > { %4433 = sst [smem:[#allocation9_spill]] %s3894_s2  ;;  %s431_s23 = sadd.s32 1, %s3748_s20 }
  0x10   : > { %s428_s24 = ssub.s32 %s3752_s21, %s3894_s2  ;;  %p441_p0 = scmp.ne.s32.totalorder %s3748_s20, %s3744_s30 }
  0x11   : > { %p429_p1 = scmp.eq.s32.totalorder %s428_s24, 0  ;;  %p442_p2 = scmp.eq.s32.totalorder %s3890_s1, 1 }
  0x12   : > { %p447_p3 = scmp.ne.s32.totalorder %s3744_s30, %s3740_s0  ;;  %p448_p4 = scmp.eq.s32.totalorder %s3157_s22, 1 }
  0x13   : > { %s3905_s25 = scalar_select %p429_p1, %s3748_s20, %s431_s23  }
  0x14   : > { %p3907_p5 = por %p442_p2, %p441_p0  ;;  %p3911_p6 = por %p448_p4, %p447_p3 }
  0x15   : > { %4434 = sst [smem:[#allocation10_spill]] %s3905_s25  ;;  %p3160_p7 = scmp.ge.s32.totalorder %s3752_s21, 1 }
  0x16   : > { %p553_p8 = scmp.lt.s32.totalorder %s3752_s21, 3 }
  0x18   : > { %p554_p9 = pnand %p3160_p7, %p553_p8 }
  0x19   : > { %p614_p10 = scmp.lt.s32.totalorder (!%p554_p9), %s3890_s1, 1  ;;  %vm626_vm0 = vcmask (!%p554_p9), 261120   ;;  %s4437_s23 = sld [smem:[#allocation11_spill]] (!%p554_p9)  ;;  %v3754_v8 = vmov (!%p554_p9), 0.0   ;;  %vm3755_vm1 = vmmov (!%p554_p9), 0   ;;  %vm735_vm2 = vcmask (!%p554_p9), 64512  }
  0x1a   : > { %557 = sbr.rel (%p554_p9) target bundleno = 8454 (0x2106), region = 92  ;;  %s4438_s4 = sld [smem:[#allocation15_spill]] (!%p554_p9)  ;;  %3343 = vmatprep.subr.bf16.mxu0 (!%p554_p9), %v3754_v8  ;;  %3351 = vmatprep.subr.mxu1 (!%p554_p9), %v3754_v8  ;;  %vm1067_vm3 = vcmask (!%p554_p9), 1043456   ;;  %vm1737_vm4 = vcmask (!%p554_p9), 523264   ;;  %vm2970_vm5 = vcmask (!%p554_p9), 253952  }
  0x1b   : > { %3347 = vmatprep.mubr.msk.bf16.mxu0 (!%p554_p9), %vm3755_vm1, %v3754_v8  ;;  %3353 = vmatprep.mubr.msk.f32.mxu1 (!%p554_p9), %vm3755_vm1, %v3754_v8  ;;  %s4439_s22 = sld [smem:[#allocation13_spill]] (!%p554_p9)  ;;  %s4441_s5 = sld [smem:[#allocation16_spill]] (!%p554_p9) }
  0x1c   : > { %s4415_s20 = smov (!%p554_p9), 64   ;;  %s3757_s25 = smov (!%p554_p9), 96  }
  0x1d   : > { %s4423_s29 = smov (!%p554_p9), 120   ;;  %s4417_s2 = smov (!%p554_p9), 80  }
  0x1e   : > { %s4443_s6 = sld [smem:[#allocation17_spill]] (!%p554_p9) }
  0x20   : > { %v3592_v7 = vld [vmem:[%s4438_s4] sm:$0xff] (!%p554_p9)   ;;  %v3593_v9 = vld [vmem:[%s4438_s4 + $0x8] sm:$0xff] (!%p554_p9)  }
  0x21   : > { %s3919_s27 = scalar_select %p614_p10, %s3890_s1, 1  ;;  %3344 = vmatpush3.bf16.msra.mxu0 %v3592_v7  ;;  %v3162_v14 = vld [vmem:[%s4439_s22] ss:$0 sm:$0xff] }
  0x22   : > { %3345 = vmatprep.subr.bf16.mxu0 %v3754_v8  ;;  %v3164_v20 = vld [vmem:[%s4441_s5] ss:$0 sm:$0xff]  ;;  %s3758_s22 = smov 88  }
  0x23   : > { %s3161_s28 = sshll.u32 %s3919_s27, 3 }
  0x24   : > { %s617_s24 = scalar_lea.vmem %s4437_s23, %s3161_s28  ;;  %s4440_s28 = sld [smem:[#allocation14_spill]]  ;;  %v723_v55 = vld [vmem:[%s4443_s6 + $0x4] sm:$0xf]  ;;  %v722_v58 = vld [vmem:[%s4443_s6] sm:$0xf] }
  0x25   : > { %v622_v0 = vld [vmem:[%s617_s24] sm:$0xff]  ;;  %3346 = vmatpush3.bf16.msra.mxu0 %v3593_v9  ;;  %s4442_s24 = sld [smem:[#allocation12_spill]]  ;;  %s4416_s23 = smov 112   ;;  %v1069_v56 = vsel %vm1067_vm3, %v723_v55, 0  ;;  %v1115_v61 = vsel %vm1067_vm3, %v722_v58, 0 }
  0x26   : > { %v627_v1 = vsel %vm626_vm0, %v622_v0, 0.0  ;;  %3366 = vmatprep.subr.mxu0 %v3754_v8 }
  0x27   : > { %628 = vadd.xlane.f32.xlu0 %v627_v1 }
  0x2a   : > { %v3163_v16 = vld [vmem:[%s4440_s28] ss:$0 sm:$0xff] }
  0x2b   : > { %s620_s28 = scalar_lea.vmem %s4442_s24, %s3919_s27  ;;  %s4418_s27 = smov 56  }
  0x2c   : > { %v3976_v28 = vld [vmem:[%s620_s28] ss:$0 sm:$0xff]  ;;  %s4422_s24 = smov 48   ;;  %s4420_s28 = smov 72  }
  0xb4   : > { %v629_v2 = vpop.xlane.xlu0 %628 }
  0xb5   : > { %v631_v3 = vmul.f32 0.03125, %v629_v2 }
  0xb7   : > { %v632_v4 = vsub.f32 %v622_v0, %v631_v3 }
  0xb9   : > { %v633_v5 = vmul.f32 %v632_v4, %v632_v4 }
  0xbb   : > { %v634_v6 = vsel %vm626_vm0, %v633_v5, 0.0 }
  0xbc   : > { %635 = vadd.xlane.f32.xlu0 %v634_v6 }
 0x149   : > { %v636_v10 = vpop.xlane.xlu0 %635 }
 0x14a   : > { %v637_v11 = vmul.f32 0.03125, %v636_v10 }
 0x14c   : > { %v638_v12 = vadd.f32 1e-12, %v637_v11 }
 0x14e   : > { %3610 = vrsqrt.f32 %v638_v12 }
 0x158   : > { %v3611_v13 = vpop.eup %3610 }
 0x159   : > { %v640_v15 = vmul.f32 %v3611_v13, %v632_v4 }
 0x15b   : > { %v647_v17 = vmul.f32 %v3162_v14, %v640_v15 }
 0x15d   : > { %v3947_v18 = vadd.f32 %v3163_v16, %v647_v17 }
 0x15f   : > { %v660_v19 = vpack.c.bf16 %v3947_v18, %v3947_v18 }
 0x161   : > { %3348 = vmatmul.mubr.msk.bf16.vlgmr.msra.gmra.mrb[0].mxu0 %vm626_vm0, %v660_v19 }
 0x162   : > { %3368 = vmatprep.mubr.msk.f32.mxu0 %vm3755_vm1, %v3754_v8 }
 0x234   : > { %v716_v21 = vpop.f32.mrb[0].mxu0 }
 0x235   : > { %v3957_v22 = vadd.f32 %v3164_v20, %v716_v21  ;;  %v3349_v23 = vpop.f32.mrb[1].mxu0 }
 0x236   : > { %v719_v24 = vpop.f32.mrb[2].mxu0 }
 0x237   : > { %821 = vrot.lane.b32.xlu0 %v3957_v22, %s4415_s20  ;;  %733 = vrot.lane.b32.xlu1 %v3957_v22, %s3757_s25  ;;  %v3350_v25 = vpop.f32.mrb[3].mxu0  ;;  %s4421_s20 = smov 104  }
 0x23b   : > { %900 = vrot.lane.b32.xlu0 %v3957_v22, %s3758_s22 }
 0x2a9   : > { %v734_v26 = vpop.permute.xlu1 %733  ;;  %v822_v27 = vpop.permute.xlu0 %821 }
 0x2aa   : > { %3352 = vmatpush3.xpose.msk.msra.mxu1 %vm735_vm2, %v734_v26 }
 0x2ab   : > { %3356 = vmatprep.subr.mxu1 %v3754_v8 }
 0x2ad   : > { %3354 = vmatmul.mubr.msk.f32.vlgmr.msra.gmra.mrb[0].mxu1 %vm735_vm2, %v3957_v22  ;;  %v901_v38 = vpop.permute.xlu0 %900 }
 0x2ae   : > { %3357 = vmatpush3.msra.mxu1 %v822_v27  ;;  %3358 = vmatprep.mubr.msk.f32.mxu1 %vm3755_vm1, %v3754_v8 }
 0x2af   : > { %3361 = vmatprep.subr.mxu1 %v3754_v8 }
 0x380   : > { %v806_v29 = vpop.f32.mrb[0].mxu1 }
 0x381   : > { %v807_v30 = vadd.f32 %v3976_v28, %v806_v29  ;;  %v3355_v31 = vpop.f32.mrb[1].mxu1 }
 0x383   : > { %v810_v32 = vsel %vm735_vm2, %v807_v30, -inf }
 0x384   : > { %811 = vmax.xlane.f32.xlu1 %v810_v32  ;;  %v724_v32 = vld [vmem:[%s4443_s6 + $0x8] sm:$0xf] }
 0x411   : > { %v812_v33 = vpop.xlane.xlu1 %811 }
 0x412   : > { %v813_v34 = vsub.f32 %v807_v30, %v812_v33  ;;  %v1327_v33 = vsel %vm1067_vm3, %v724_v32, 0 }
 0x414   : > { %v814_v35 = vmul.f32 1.442695, %v813_v34 }
 0x416   : > { %3612 = vpow2.f32 %v814_v35 }
 0x420   : > { %v3613_v36 = vpop.eup %3612 }
 0x421   : > { %v816_v37 = vsel %vm735_vm2, %v3613_v36, 0.0 }
 0x422   : > { %817 = vadd.xlane.f32.xlu0 %v816_v37 }
 0x438   : > { %898 = vrot.lane.b32.xlu0 %v3957_v22, %s4423_s29  ;;  %s4448_s29 = smov 64  }
 0x4af   : > { %v818_v39 = vpop.xlane.xlu0 %817 }
 0x4b0   : > { %3614 = vrcp.f32 %v818_v39 }
 0x4b3   : > { %v899_v42 = vpop.permute.xlu0 %898 }
 0x4ba   : > { %v3615_v40 = vpop.eup %3614 }
 0x4bb   : > { %v820_v41 = vmul.f32 %v3615_v40, %v3613_v36 }
 0x4bd   : > { %3359 = vmatmul.mubr.msk.f32.vlgmr.msra.gmra.mrb[2].mxu1 %vm735_vm2, %v820_v41 }
 0x4be   : > { %3362 = vmatpush3.xpose.msk.msra.mxu1 %vm735_vm2, %v901_v38  ;;  %3363 = vmatprep.mubr.msk.f32.mxu1 %vm3755_vm1, %v3754_v8 }
 0x4bf   : > { %3371 = vmatprep.subr.bf16.mxu1 %v3754_v8 }
 0x4c1   : > { %3364 = vmatmul.mubr.msk.f32.vlgmr.msra.gmra.mrb[4].mxu1 %vm735_vm2, %v899_v42 }
 0x4c2   : > { %3373 = vmatprep.mubr.msk.bf16.mxu1 %vm3755_vm1, %v3754_v8  ;;  %3372 = vmatpush3.bf16.msra.mxu1 %v1069_v56 }
 0x4c3   : > { %3383 = vmatprep.subr.mxu1 %v3754_v8 }
 0x590   : > { %v893_v43 = vpop.f32.mrb[2].mxu1 }
 0x591   : > { %v3360_v44 = vpop.f32.mrb[3].mxu1  ;;  %v897_v62 = vpack.c.bf16 %v893_v43, %v893_v43 }
 0x594   : > { %v972_v45 = vpop.f32.mrb[4].mxu1 }
 0x595   : > { %v973_v46 = vadd.f32 %v3976_v28, %v972_v45  ;;  %v3365_v47 = vpop.f32.mrb[5].mxu1 }
 0x597   : > { %v976_v48 = vsel %vm735_vm2, %v973_v46, -inf }
 0x598   : > { %977 = vmax.xlane.f32.xlu1 %v976_v48 }
 0x5a9   : > { %987 = vrot.lane.b32.xlu1 %v3957_v22, %s4418_s27 }
 0x5ad   : > { %1159 = vrot.lane.b32.xlu1 %v3957_v22, %s4417_s2  ;;  %s4444_s2 = smov 120  }
 0x5b1   : > { %1157 = vrot.lane.b32.xlu1 %v3957_v22, %s4416_s23  ;;  %s4419_s23 = smov 40  }
 0x625   : > { %v978_v49 = vpop.xlane.xlu1 %977 }
 0x626   : > { %v979_v50 = vsub.f32 %v973_v46, %v978_v49 }
 0x628   : > { %v980_v51 = vmul.f32 1.442695, %v979_v50 }
 0x629   : > { %v988_v52 = vpop.permute.xlu1 %987 }
 0x62a   : > { %3616 = vpow2.f32 %v980_v51  ;;  %3367 = vmatpush3.msra.mxu0 %v988_v52 }
 0x62b   : > { %3377 = vmatprep.subr.bf16.mxu0 %v3754_v8 }
 0x62d   : > { %v1160_v3 = vpop.permute.xlu1 %1159 }
 0x631   : > { %v1158_v9 = vpop.permute.xlu1 %1157 }
 0x634   : > { %v3617_v53 = vpop.eup %3616 }
 0x635   : > { %v982_v54 = vsel %vm735_vm2, %v3617_v53, 0.0 }
 0x636   : > { %983 = vadd.xlane.f32.xlu0 %v982_v54  ;;  %v725_v54 = vld [vmem:[%s4443_s6 + $0xc] sm:$0xf] }
 0x637   : > { %v1540_v55 = vsel %vm1067_vm3, %v725_v54, 0 }
 0x64c   : > { %1246 = vrot.lane.b32.xlu0 %v3957_v22, %s4422_s24  ;;  %s4447_s24 = smov 112  }
 0x650   : > { %1372 = vrot.lane.b32.xlu0 %v3957_v22, %s4420_s28 }
 0x6c3   : > { %v984_v57 = vpop.xlane.xlu0 %983 }
 0x6c4   : > { %3618 = vrcp.f32 %v984_v57 }
 0x6c7   : > { %v1247_v63 = vpop.permute.xlu0 %1246 }
 0x6cb   : > { %v1373_v26 = vpop.permute.xlu0 %1372 }
 0x6ce   : > { %v3619_v59 = vpop.eup %3618 }
 0x6cf   : > { %v986_v60 = vmul.f32 %v3619_v59, %v3617_v53 }
 0x6d1   : > { %3369 = vmatmul.mubr.msk.f32.vlgmr.msra.gmra.mrb[4].mxu0 %vm735_vm2, %v986_v60  ;;  %v3185_v60 = vld [vmem:[%s4399_s7] ss:$0 sm:$0xff] }
 0x6d2   : > { %3378 = vmatpush3.bf16.msra.mxu0 %v1115_v61  ;;  %3379 = vmatprep.mubr.msk.bf16.mxu0 %vm3755_vm1, %v3754_v8 }
 0x6d3   : > { %3388 = vmatprep.subr.mxu0 %v3754_v8 }
 0x6d5   : > { %3380 = vmatmul.mubr.msk.bf16.vlgmr.msra.gmra.mrb[8].mxu0 %vm735_vm2, %v897_v62 }
 0x6d6   : > { %3389 = vmatpush3.msra.mxu0 %v1247_v63  ;;  %3390 = vmatprep.mubr.msk.f32.mxu0 %vm3755_vm1, %v3754_v8 }
 0x6d7   : > { %3399 = vmatprep.subr.mxu0 %v3754_v8 }
 0x7a4   : > { %v1059_v0 = vpop.f32.mrb[4].mxu0 }
 0x7a5   : > { %v1063_v1 = vpack.c.bf16 %v1059_v0, %v1059_v0  ;;  %v3370_v2 = vpop.f32.mrb[5].mxu0 }
 0x7a7   : > { %3374 = vmatmul.mubr.msk.bf16.vlgmr.msra.gmra.mrb[8].mxu1 %vm735_vm2, %v1063_v1 }
 0x7a8   : > { %3384 = vmatpush3.xpose.msk.msra.mxu1 %vm735_vm2, %v1160_v3  ;;  %v1151_v4 = vpop.f32.mrb[8].mxu0  ;;  %3385 = vmatprep.mubr.msk.f32.mxu1 %vm3755_vm1, %v3754_v8 }
 0x7a9   : > { %v3381_v5 = vpop.f32.mrb[9].mxu0  ;;  %3393 = vmatprep.subr.bf16.mxu1 %v3754_v8 }
 0x7aa   : > { %v1154_v6 = vpop.f32.mrb[10].mxu0 }
 0x7ab   : > { %v3382_v7 = vpop.f32.mrb[11].mxu0 }
 0x7af   : > { %3386 = vmatmul.mubr.msk.f32.vlgmr.msra.gmra.mrb[6].mxu1 %vm735_vm2, %v1158_v9 }
 0x7b0   : > { %3395 = vmatprep.mubr.msk.bf16.mxu1 %vm3755_vm1, %v3754_v8  ;;  %3394 = vmatpush3.bf16.msra.mxu1 %v1327_v33 }
 0x7b1   : > { %3409 = vmatprep.subr.bf16.mxu1 %v3754_v8 }
 0x87a   : > { %v1105_v10 = vpop.f32.mrb[8].mxu1 }
 0x87b   : > { %v1152_v11 = vadd.f32 %v1151_v4, %v1105_v10  ;;  %v3375_v12 = vpop.f32.mrb[9].mxu1  ;;  %v3594_v10 = vld [vmem:[%s4402_s10] sm:$0xff]  }
 0x87c   : > { %v1108_v13 = vpop.f32.mrb[10].mxu1 }
 0x87d   : > { %v3376_v14 = vpop.f32.mrb[11].mxu1 }
 0x882   : > { %v1231_v15 = vpop.f32.mrb[6].mxu1 }
 0x883   : > { %v1232_v16 = vadd.f32 %v3976_v28, %v1231_v15  ;;  %v3387_v17 = vpop.f32.mrb[7].mxu1  ;;  %v3186_v15 = vld [vmem:[%s4400_s8] ss:$0 sm:$0xff] }
 0x884   : > { %v3187_v17 = vld [vmem:[%s4401_s9] ss:$0 sm:$0xff] }
 0x885   : > { %v1235_v19 = vsel %vm735_vm2, %v1232_v16, -inf }
 0x886   : > { %1236 = vmax.xlane.f32.xlu1 %v1235_v19 }
 0x913   : > { %v1237_v20 = vpop.xlane.xlu1 %1236 }
 0x914   : > { %v1238_v21 = vsub.f32 %v1232_v16, %v1237_v20 }
 0x916   : > { %v1239_v23 = vmul.f32 1.442695, %v1238_v21 }
 0x918   : > { %3620 = vpow2.f32 %v1239_v23  ;;  %v3596_v23 = vld [vmem:[%s4404_s12] sm:$0xff]  }
 0x922   : > { %v3621_v24 = vpop.eup %3620 }
 0x923   : > { %v1241_v25 = vsel %vm735_vm2, %v3621_v24, 0.0 }
 0x924   : > { %1242 = vadd.xlane.f32.xlu0 %v1241_v25  ;;  %v3598_v25 = vld [vmem:[%s4404_s12 + $0x10] sm:$0xff]  }
 0x93a   : > { %1370 = vrot.lane.b32.xlu0 %v3957_v22, %s4421_s20  ;;  %s4452_s20 = smov 40  }
 0x9b1   : > { %v1243_v27 = vpop.xlane.xlu0 %1242 }
 0x9b2   : > { %3622 = vrcp.f32 %v1243_v27  ;;  %v3188_v27 = vld [vmem:[%s4403_s11] ss:$0 sm:$0xff] }
 0x9b5   : > { %v1371_v31 = vpop.permute.xlu0 %1370 }
 0x9bc   : > { %v3623_v29 = vpop.eup %3622 }
 0x9bd   : > { %v1245_v30 = vmul.f32 %v3623_v29, %v3621_v24  ;;  %v3597_v24 = vld [vmem:[%s4404_s12 + $0x8] sm:$0xff]  }
 0x9bf   : > { %3391 = vmatmul.mubr.msk.f32.vlgmr.msra.gmra.mrb[6].mxu0 %vm735_vm2, %v1245_v30 }
 0x9c0   : > { %3400 = vmatpush3.xpose.msk.msra.mxu0 %vm735_vm2, %v1373_v26  ;;  %3401 = vmatprep.mubr.msk.f32.mxu0 %vm3755_vm1, %v3754_v8  ;;  %v3599_v26 = vld [vmem:[%s4404_s12 + $0x18] sm:$0xff]  }
 0x9c1   : > { %3404 = vmatprep.subr.mxu0 %v3754_v8 }
 0x9c3   : > { %3402 = vmatmul.mubr.msk.f32.vlgmr.msra.gmra.mrb[12].mxu0 %vm735_vm2, %v1371_v31 }
 0x9c4   : > { %3406 = vmatprep.mubr.msk.f32.mxu0 %vm3755_vm1, %v3754_v8 }
 0xa92   : > { %v1318_v34 = vpop.f32.mrb[6].mxu0 }
 0xa93   : > { %v1322_v35 = vpack.c.bf16 %v1318_v34, %v1318_v34  ;;  %v3392_v36 = vpop.f32.mrb[7].mxu0 }
 0xa95   : > { %3396 = vmatmul.mubr.msk.bf16.vlgmr.msra.gmra.mrb[12].mxu1 %vm735_vm2, %v1322_v35 }
 0xa96   : > { %v1444_v37 = vpop.f32.mrb[12].mxu0  ;;  %3411 = vmatprep.mubr.msk.bf16.mxu1 %vm3755_vm1, %v3754_v8  ;;  %3410 = vmatpush3.bf16.msra.mxu1 %v1540_v55 }
 0xa97   : > { %v1445_v38 = vadd.f32 %v3976_v28, %v1444_v37  ;;  %v3403_v39 = vpop.f32.mrb[13].mxu0  ;;  %3423 = vmatprep.subr.bf16.mxu1 %v3754_v8 }
 0xa99   : > { %v1448_v40 = vsel %vm735_vm2, %v1445_v38, -inf }
 0xa9a   : > { %1449 = vmax.xlane.f32.xlu1 %v1448_v40 }
 0xaab   : > { %1459 = vrot.lane.b32.xlu1 %v3957_v22, %s4419_s23 }
 0xb27   : > { %v1450_v41 = vpop.xlane.xlu1 %1449 }
 0xb28   : > { %v1451_v42 = vsub.f32 %v1445_v38, %v1450_v41 }
 0xb2a   : > { %v1452_v43 = vmul.f32 1.442695, %v1451_v42 }
 0xb2b   : > { %v1460_v44 = vpop.permute.xlu1 %1459 }
 0xb2c   : > { %3624 = vpow2.f32 %v1452_v43  ;;  %3405 = vmatpush3.msra.mxu0 %v1460_v44  ;;  %v3192_v44 = vld [vmem:[%s4405_s13] ss:$0 sm:$0xff] }
 0xb2d   : > { %3415 = vmatprep.subr.bf16.mxu0 %v3754_v8 }
 0xb36   : > { %v3625_v45 = vpop.eup %3624 }
 0xb37   : > { %v1454_v46 = vsel %vm735_vm2, %v3625_v45, 0.0 }
 0xb38   : > { %1455 = vadd.xlane.f32.xlu0 %v1454_v46 }
 0xb68   : > { %v1363_v47 = vpop.f32.mrb[12].mxu1 }
 0xb69   : > { %v1369_v48 = vadd.f32 %v1363_v47, %v1152_v11  ;;  %v3397_v49 = vpop.f32.mrb[13].mxu1  ;;  %v3595_v11 = vld [vmem:[%s4402_s10 + $0x8] sm:$0xff]  }
 0xb6a   : > { %v1366_v50 = vpop.f32.mrb[14].mxu1 }
 0xb6b   : > { %v3398_v51 = vpop.f32.mrb[15].mxu1 }
 0xbc5   : > { %v1456_v52 = vpop.xlane.xlu0 %1455 }
 0xbc6   : > { %3626 = vrcp.f32 %v1456_v52 }
 0xbd0   : > { %v3627_v22 = vpop.eup %3626 }
 0xbd1   : > { %v1458_v53 = vmul.f32 %v3627_v22, %v3625_v45 }
 0xbd3   : > { %3407 = vmatmul.mubr.msk.f32.vlgmr.msra.gmra.mrb[14].mxu0 %vm735_vm2, %v1458_v53 }
 0xbd4   : > { %3419 = vmatprep.mubr.msk.bf16.mxu0 %vm3755_vm1, %v3754_v8  ;;  %3416 = vmatpush3.bf16.msra.mxu0 %v3594_v10 }
 0xbd5   : > { %3417 = vmatprep.subr.bf16.mxu0 %v3754_v8 }
 0xbd8   : > { %3418 = vmatpush3.bf16.msra.mxu0 %v3595_v11 }
 0xbd9   : > { %3435 = vmatprep.subr.bf16.mxu0 %v3754_v8 }
 0xca6   : > { %v1531_v56 = vpop.f32.mrb[14].mxu0 }
 0xca7   : > { %v1535_v57 = vpack.c.bf16 %v1531_v56, %v1531_v56  ;;  %v3408_v58 = vpop.f32.mrb[15].mxu0  ;;  %v3600_v56 = vld [vmem:[%s4438_s4 + $0x10] sm:$0xff]  }
 0xca9   : > { %3412 = vmatmul.mubr.msk.bf16.vlgmr.msra.gmra.mrb[16].mxu1 %vm735_vm2, %v1535_v57  ;;  %v3601_v57 = vld [vmem:[%s4438_s4 + $0x18] sm:$0xff]   ;;  %s3767_s4 = smov [#allocation2]  }
 0xcaa   : > { %3431 = vmatprep.mubr.msk.bf16.mxu1 %vm3755_vm1, %v3754_v8  ;;  %3424 = vmatpush3.bf16.msra.mxu1 %v3596_v23 }
 0xcab   : > { %3425 = vmatprep.subr.bf16.mxu1 %v3754_v8 }
 0xcae   : > { %3426 = vmatpush3.bf16.msra.mxu1 %v3597_v24 }
 0xcaf   : > { %3427 = vmatprep.subr.bf16.mxu1 %v3754_v8 }
 0xcb2   : > { %3428 = vmatpush3.bf16.msra.mxu1 %v3598_v25 }
 0xcb3   : > { %3429 = vmatprep.subr.bf16.mxu1 %v3754_v8 }
 0xcb6   : > { %3430 = vmatpush3.bf16.msra.mxu1 %v3599_v26 }
 0xcb7   : > { %3448 = vmatprep.subr.mxu1 %v3754_v8 }
 0xd7c   : > { %v1576_v59 = vpop.f32.mrb[16].mxu1 }
 0xd7d   : > { %v1582_v61 = vadd.f32 %v1576_v59, %v1369_v48  ;;  %v3413_v62 = vpop.f32.mrb[17].mxu1 }
 0xd7e   : > { %v1579_v63 = vpop.f32.mrb[18].mxu1  ;;  %v3198_v62 = vld [vmem:[%s4406_s14] ss:$0 sm:$0xff] }
 0xd7f   : > { %v1590_v0 = vadd.f32 %v3185_v60, %v1582_v61  ;;  %v3414_v1 = vpop.f32.mrb[19].mxu1 }
 0xd81   : > { %v1591_v2 = vadd.f32 %v1590_v0, %v3947_v18  ;;  %v3199_v0 = vld [vmem:[%s4407_s15] ss:$0 sm:$0xff] }
 0xd83   : > { %v1594_v3 = vsel %vm626_vm0, %v1591_v2, 0.0 }
 0xd84   : > { %1595 = vadd.xlane.f32.xlu1 %v1594_v3 }
 0xe11   : > { %v1596_v4 = vpop.xlane.xlu1 %1595 }
 0xe12   : > { %v1597_v5 = vmul.f32 0.03125, %v1596_v4  ;;  %v3205_v4 = vld [vmem:[%s4441_s5 + $0x1] ss:$0 sm:$0xff]  ;;  %s3662_s5 = sshll.u32 %s3767_s4, 4  ;;  %s3663_s5 = int_to_ptr.vmem [resolvable:$false] %s3662_s5 }
 0xe14   : > { %v1598_v6 = vsub.f32 %v1591_v2, %v1597_v5 }
 0xe16   : > { %v1599_v7 = vmul.f32 %v1598_v6, %v1598_v6 }
 0xe18   : > { %v1600_v9 = vsel %vm626_vm0, %v1599_v7, 0.0 }
 0xe19   : > { %1601 = vadd.xlane.f32.xlu0 %v1600_v9 }
 0xea6   : > { %v1602_v18 = vpop.xlane.xlu0 %1601 }
 0xea7   : > { %v1603_v12 = vmul.f32 0.03125, %v1602_v18 }
 0xea9   : > { %v1604_v13 = vadd.f32 1e-12, %v1603_v12 }
 0xeab   : > { %3628 = vrsqrt.f32 %v1604_v13 }
 0xeb5   : > { %v3629_v14 = vpop.eup %3628 }
 0xeb6   : > { %v1606_v16 = vmul.f32 %v3629_v14, %v1598_v6 }
 0xeb8   : > { %v1613_v19 = vmul.f32 %v3186_v15, %v1606_v16 }
 0xeba   : > { %v1620_v20 = vadd.f32 %v3187_v17, %v1613_v19 }
 0xebc   : > { %v1626_v21 = vpack.c.bf16 %v1620_v20, %v1620_v20 }
 0xebe   : > { %3420 = vmatmul.mubr.msk.bf16.vlgmr.msra.gmra.mrb[16].mxu0 %vm626_vm0, %v1626_v21 }
 0xebf   : > { %3439 = vmatprep.mubr.msk.bf16.mxu0 %vm3755_vm1, %v3754_v8  ;;  %3436 = vmatpush3.bf16.msra.mxu0 %v3600_v56 }
 0xec0   : > { %3437 = vmatprep.subr.bf16.mxu0 %v3754_v8 }
 0xec3   : > { %3438 = vmatpush3.bf16.msra.mxu0 %v3601_v57 }
 0xec4   : > { %3443 = vmatprep.subr.mxu0 %v3754_v8 }
 0xf91   : > { %v1682_v29 = vpop.f32.mrb[16].mxu0 }
 0xf92   : > { %v1683_v30 = vadd.f32 %v3188_v27, %v1682_v29  ;;  %v3421_v31 = vpop.f32.mrb[17].mxu0 }
 0xf93   : > { %v1685_v32 = vpop.f32.mrb[18].mxu0 }
 0xf94   : > { %v1688_v33 = vmul.f32 %v1683_v30, %v1683_v30  ;;  %v3422_v34 = vpop.f32.mrb[19].mxu0 }
 0xf95   : > { %v3210_v34 = vld [vmem:[%s4443_s6 + $0x14] sm:$0xf] }
 0xf96   : > { %v1689_v35 = vmul.f32 %v1688_v33, %v1683_v30 }
 0xf98   : > { %v1690_v36 = vmul.f32 0.044715, %v1689_v35  ;;  %v2220_v35 = vsel %vm1067_vm3, %v3210_v34, 0 }
 0xf9a   : > { %v1691_v37 = vadd.f32 %v1690_v36, %v1683_v30 }
 0xf9c   : > { %v1692_v38 = vmul.f32 0.7978846, %v1691_v37 }
 0xf9e   : > { %3630 = vtanh.f32 %v1692_v38 }
 0xfa8   : > { %v3631_v39 = vpop.eup %3630 }
 0xfa9   : > { %v1694_v40 = vadd.f32 1.0, %v3631_v39 }
 0xfab   : > { %v1695_v41 = vmul.f32 0.5, %v1694_v40 }
 0xfad   : > { %v1696_v42 = vmul.f32 %v1695_v41, %v1683_v30 }
 0xfaf   : > { %v1706_v43 = vpack.c.bf16 %v1696_v42, %v1696_v42 }
 0xfb1   : > { %3432 = vmatmul.mubr.msk.bf16.vlgmr.msra.gmra.mrb[20].mxu1 %vm1737_vm4, %v1706_v43 }
 0xfb2   : > { %3450 = vmatprep.mubr.msk.f32.mxu1 %vm3755_vm1, %v3754_v8 }
0x1084   : > { %v1775_v45 = vpop.f32.mrb[20].mxu1 }
0x1085   : > { %v1776_v46 = vadd.f32 %v3192_v44, %v1775_v45  ;;  %v3433_v47 = vpop.f32.mrb[21].mxu1  ;;  %v3209_v44 = vld [vmem:[%s4443_s6 + $0x10] sm:$0xf] }
0x1086   : > { %v1778_v48 = vpop.f32.mrb[22].mxu1  ;;  %v2266_v45 = vsel %vm1067_vm3, %v3209_v44, 0 }
0x1087   : > { %v3434_v49 = vpop.f32.mrb[23].mxu1  ;;  %v1781_v50 = vadd.f32 %v1776_v46, %v1620_v20 }
0x1089   : > { %v1784_v51 = vsel %vm626_vm0, %v1781_v50, 0.0 }
0x108a   : > { %1785 = vadd.xlane.f32.xlu0 %v1784_v51 }
0x1117   : > { %v1786_v52 = vpop.xlane.xlu0 %1785 }
0x1118   : > { %v1787_v22 = vmul.f32 0.03125, %v1786_v52 }
0x111a   : > { %v1788_v53 = vsub.f32 %v1781_v50, %v1787_v22 }
0x111c   : > { %v1789_v54 = vmul.f32 %v1788_v53, %v1788_v53 }
0x111e   : > { %v1790_v55 = vsel %vm626_vm0, %v1789_v54, 0.0 }
0x111f   : > { %1791 = vadd.xlane.f32.xlu0 %v1790_v55 }
0x11ac   : > { %v1792_v58 = vpop.xlane.xlu0 %1791 }
0x11ad   : > { %v1793_v59 = vmul.f32 0.03125, %v1792_v58 }
0x11af   : > { %v1794_v60 = vadd.f32 1e-12, %v1793_v59 }
0x11b1   : > { %3632 = vrsqrt.f32 %v1794_v60 }
0x11bb   : > { %v3633_v61 = vpop.eup %3632 }
0x11bc   : > { %v1796_v63 = vmul.f32 %v3633_v61, %v1788_v53 }
0x11be   : > { %v1803_v1 = vmul.f32 %v3198_v62, %v1796_v63 }
0x11c0   : > { %v4132_v2 = vadd.f32 %v3199_v0, %v1803_v1 }
0x11c2   : > { %v1818_v3 = vpack.c.bf16 %v4132_v2, %v4132_v2 }
0x11c4   : > { %3440 = vmatmul.mubr.msk.bf16.vlgmr.msra.gmra.mrb[20].mxu0 %vm626_vm0, %v1818_v3 }
0x11c5   : > { %3445 = vmatprep.mubr.msk.f32.mxu0 %vm3755_vm1, %v3754_v8 }
0x1297   : > { %v1874_v5 = vpop.f32.mrb[20].mxu0 }
0x1298   : > { %v4142_v6 = vadd.f32 %v3205_v4, %v1874_v5  ;;  %v3441_v7 = vpop.f32.mrb[21].mxu0 }
0x1299   : > { %v1877_v9 = vpop.f32.mrb[22].mxu0 }
0x129a   : > { %2052 = vrot.lane.b32.xlu1 %v4142_v6, %s3758_s22  ;;  %1886 = vrot.lane.b32.xlu0 %v4142_v6, %s3757_s25  ;;  %v3442_v10 = vpop.f32.mrb[23].mxu0  ;;  %s4445_s25 = smov 56   ;;  %s4446_s22 = smov 80  }
0x129e   : > { %2050 = vrot.lane.b32.xlu0 %v4142_v6, %s4444_s2  ;;  %s4449_s2 = smov 48  }
0x130c   : > { %v1887_v11 = vpop.permute.xlu0 %1886  ;;  %v2053_v18 = vpop.permute.xlu1 %2052 }
0x130d   : > { %3444 = vmatpush3.xpose.msk.msra.mxu0 %vm735_vm2, %v1887_v11 }
0x130e   : > { %3453 = vmatprep.subr.mxu0 %v3754_v8 }
0x1310   : > { %3446 = vmatmul.mubr.msk.f32.vlgmr.msra.gmra.mrb[24].mxu0 %vm735_vm2, %v4142_v6  ;;  %v2051_v12 = vpop.permute.xlu0 %2050 }
0x1311   : > { %3454 = vmatpush3.xpose.msk.msra.mxu0 %vm735_vm2, %v2053_v18  ;;  %3455 = vmatprep.mubr.msk.f32.mxu0 %vm3755_vm1, %v3754_v8 }
0x1312   : > { %3463 = vmatprep.subr.bf16.mxu0 %v3754_v8 }
0x1314   : > { %3456 = vmatmul.mubr.msk.f32.vlgmr.msra.gmra.mrb[26].mxu0 %vm735_vm2, %v2051_v12 }
0x1315   : > { %3465 = vmatprep.mubr.msk.bf16.mxu0 %vm3755_vm1, %v3754_v8  ;;  %3464 = vmatpush3.bf16.msra.mxu0 %v2220_v35 }
0x1316   : > { %3475 = vmatprep.subr.mxu0 %v3754_v8 }
0x13e3   : > { %v1958_v13 = vpop.f32.mrb[24].mxu0 }
0x13e4   : > { %v1959_v14 = vadd.f32 %v3976_v28, %v1958_v13  ;;  %v3447_v15 = vpop.f32.mrb[25].mxu0 }
0x13e5   : > { %v3211_v15 = vld [vmem:[%s4443_s6 + $0x18] sm:$0xf] }
0x13e6   : > { %v1962_v16 = vsel %vm735_vm2, %v1959_v14, -inf }
0x13e7   : > { %1963 = vmax.xlane.f32.xlu0 %v1962_v16  ;;  %v2124_v17 = vpop.f32.mrb[26].mxu0  ;;  %v2478_v16 = vsel %vm1067_vm3, %v3211_v15, 0 }
0x13e8   : > { %v2125_v19 = vadd.f32 %v3976_v28, %v2124_v17  ;;  %v3457_v20 = vpop.f32.mrb[27].mxu0 }
0x13ea   : > { %v2128_v21 = vsel %vm735_vm2, %v2125_v19, -inf }
0x13eb   : > { %2129 = vmax.xlane.f32.xlu1 %v2128_v21 }
0x13fc   : > { %2139 = vrot.lane.b32.xlu1 %v4142_v6, %s4445_s25  ;;  %s4450_s25 = smov 104  }
0x1400   : > { %2310 = vrot.lane.b32.xlu1 %v4142_v6, %s4446_s22  ;;  %s4451_s22 = smov 72  }
0x1404   : > { %2308 = vrot.lane.b32.xlu1 %v4142_v6, %s4447_s24 }
0x1474   : > { %v1964_v23 = vpop.xlane.xlu0 %1963 }
0x1475   : > { %v1965_v24 = vsub.f32 %v1959_v14, %v1964_v23 }
0x1477   : > { %v1966_v25 = vmul.f32 1.442695, %v1965_v24 }
0x1478   : > { %v2130_v26 = vpop.xlane.xlu1 %2129 }
0x1479   : > { %3634 = vpow2.f32 %v1966_v25  ;;  %v2131_v27 = vsub.f32 %v2125_v19, %v2130_v26 }
0x147b   : > { %v2132_v29 = vmul.f32 1.442695, %v2131_v27 }
0x147c   : > { %v2140_v41 = vpop.permute.xlu1 %2139 }
0x147d   : > { %3636 = vpow2.f32 %v2132_v29 }
0x1480   : > { %v2311_v52 = vpop.permute.xlu1 %2310 }
0x1483   : > { %v3635_v30 = vpop.eup %3634 }
0x1484   : > { %v1968_v31 = vsel %vm735_vm2, %v3635_v30, 0.0  ;;  %v2309_v22 = vpop.permute.xlu1 %2308 }
0x1485   : > { %1969 = vadd.xlane.f32.xlu0 %v1968_v31 }
0x1487   : > { %v3637_v32 = vpop.eup %3636 }
0x1488   : > { %v2134_v33 = vsel %vm735_vm2, %v3637_v32, 0.0 }
0x1489   : > { %2135 = vadd.xlane.f32.xlu0 %v2134_v33 }
0x149f   : > { %1973 = vrot.lane.b32.xlu0 %v4142_v6, %s4448_s29  ;;  %s4424_s29 = sshll.u32 %s3890_s1, 4 }
0x14a0   : > { %s4319_s28 = scalar_lea.hbm %s4410_s18, %s4424_s29 }
0x1512   : > { %v1970_v36 = vpop.xlane.xlu0 %1969 }
0x1513   : > { %3638 = vrcp.f32 %v1970_v36 }
0x1516   : > { %v2136_v37 = vpop.xlane.xlu0 %2135 }
0x1517   : > { %3640 = vrcp.f32 %v2136_v37 }
0x151a   : > { %v1974_v38 = vpop.permute.xlu0 %1973 }
0x151b   : > { %3449 = vmatpush3.msra.mxu1 %v1974_v38 }
0x151c   : > { %3458 = vmatprep.subr.mxu1 %v3754_v8 }
0x151d   : > { %v3639_v39 = vpop.eup %3638 }
0x151e   : > { %v1972_v40 = vmul.f32 %v3639_v39, %v3635_v30 }
0x1520   : > { %3451 = vmatmul.mubr.msk.f32.vlgmr.msra.gmra.mrb[24].mxu1 %vm735_vm2, %v1972_v40 }
0x1521   : > { %v3641_v42 = vpop.eup %3640  ;;  %3459 = vmatpush3.msra.mxu1 %v2140_v41  ;;  %3460 = vmatprep.mubr.msk.f32.mxu1 %vm3755_vm1, %v3754_v8 }
0x1522   : > { %v2138_v43 = vmul.f32 %v3641_v42, %v3637_v32  ;;  %3469 = vmatprep.subr.bf16.mxu1 %v3754_v8 }
0x1524   : > { %3461 = vmatmul.mubr.msk.f32.vlgmr.msra.gmra.mrb[26].mxu1 %vm735_vm2, %v2138_v43 }
0x1525   : > { %3471 = vmatprep.mubr.msk.bf16.mxu1 %vm3755_vm1, %v3754_v8  ;;  %3470 = vmatpush3.bf16.msra.mxu1 %v2266_v45  ;;  %v3230_v45 = vld [vmem:[%s4399_s7 + $0x1] ss:$0 sm:$0xff] }
0x1526   : > { %3480 = vmatprep.subr.mxu1 %v3754_v8 }
0x15f3   : > { %v2045_v46 = vpop.f32.mrb[24].mxu1 }
0x15f4   : > { %v2049_v47 = vpack.c.bf16 %v2045_v46, %v2045_v46  ;;  %v3452_v48 = vpop.f32.mrb[25].mxu1 }
0x15f6   : > { %3472 = vmatmul.mubr.msk.bf16.vlgmr.msra.gmra.mrb[28].mxu1 %vm735_vm2, %v2049_v47 }
0x15f7   : > { %v2211_v49 = vpop.f32.mrb[26].mxu1  ;;  %3482 = vmatprep.mubr.msk.f32.mxu1 %vm3755_vm1, %v3754_v8 }
0x15f8   : > { %v2215_v50 = vpack.c.bf16 %v2211_v49, %v2211_v49  ;;  %v3462_v51 = vpop.f32.mrb[27].mxu1 }
0x15fa   : > { %3466 = vmatmul.mubr.msk.bf16.vlgmr.msra.gmra.mrb[28].mxu0 %vm735_vm2, %v2215_v50 }
0x15fb   : > { %3476 = vmatpush3.xpose.msk.msra.mxu0 %vm735_vm2, %v2311_v52  ;;  %3477 = vmatprep.mubr.msk.f32.mxu0 %vm3755_vm1, %v3754_v8 }
0x15fc   : > { %3485 = vmatprep.subr.bf16.mxu0 %v3754_v8 }
0x1602   : > { %3478 = vmatmul.mubr.msk.f32.vlgmr.msra.gmra.mrb[32].mxu0 %vm735_vm2, %v2309_v22 }
0x1603   : > { %3487 = vmatprep.mubr.msk.bf16.mxu0 %vm3755_vm1, %v3754_v8  ;;  %3486 = vmatpush3.bf16.msra.mxu0 %v2478_v16 }
0x1604   : > { %3501 = vmatprep.subr.bf16.mxu0 %v3754_v8 }
0x16c9   : > { %v2302_v53 = vpop.f32.mrb[28].mxu1 }
0x16ca   : > { %v3473_v54 = vpop.f32.mrb[29].mxu1 }
0x16cb   : > { %v2305_v55 = vpop.f32.mrb[30].mxu1 }
0x16cc   : > { %v3474_v56 = vpop.f32.mrb[31].mxu1 }
0x16cd   : > { %v2256_v57 = vpop.f32.mrb[28].mxu0 }
0x16ce   : > { %v2303_v58 = vadd.f32 %v2302_v53, %v2256_v57  ;;  %v3467_v59 = vpop.f32.mrb[29].mxu0  ;;  %v3602_v57 = vld [vmem:[%s4402_s10 + $0x10] sm:$0xff]  }
0x16cf   : > { %v2259_v60 = vpop.f32.mrb[30].mxu0 }
0x16d0   : > { %v3468_v61 = vpop.f32.mrb[31].mxu0 }
0x16d5   : > { %v2382_v62 = vpop.f32.mrb[32].mxu0 }
0x16d6   : > { %v2383_v63 = vadd.f32 %v3976_v28, %v2382_v62  ;;  %v3479_v0 = vpop.f32.mrb[33].mxu0  ;;  %v3233_v62 = vld [vmem:[%s4400_s8 + $0x1] ss:$0 sm:$0xff] }
0x16d7   : > { %v3234_v0 = vld [vmem:[%s4401_s9 + $0x1] ss:$0 sm:$0xff] }
0x16d8   : > { %v2386_v1 = vsel %vm735_vm2, %v2383_v63, -inf }
0x16d9   : > { %2387 = vmax.xlane.f32.xlu0 %v2386_v1 }
0x16ef   : > { %2397 = vrot.lane.b32.xlu0 %v4142_v6, %s4449_s2  ;;  %s4305_s2 = sand.u32 1, %s3744_s30  }
0x16f0   : > { %s607_s24 = scalar_lea.vmem [#allocation2], %s4305_s2 }
0x16f1   : > { %s3052_s23 = sshll.u32 %s607_s24, 4  ;;  %s3053_s23 = int_to_ptr.vmem [resolvable:$true] %s3052_s23 }
0x16f2   : > { %p3665_p0 = scmp.lt.s32.totalorder %s3053_s23, %s3663_s5 }
0x16f3   : > { %2521 = vrot.lane.b32.xlu0 %v4142_v6, %s4450_s25  ;;  %s3036_s25 = scalar_lea.sflag [#allocation3], %s4305_s2 }
0x1766   : > { %v2388_v3 = vpop.xlane.xlu0 %2387 }
0x1767   : > { %v2389_v4 = vsub.f32 %v2383_v63, %v2388_v3 }
0x1769   : > { %v2390_v5 = vmul.f32 1.442695, %v2389_v4 }
0x176a   : > { %v2398_v7 = vpop.permute.xlu0 %2397 }
0x176b   : > { %3642 = vpow2.f32 %v2390_v5  ;;  %3481 = vmatpush3.msra.mxu1 %v2398_v7  ;;  %v3604_v5 = vld [vmem:[%s4404_s12 + $0x20] sm:$0xff]   ;;  %v3605_v7 = vld [vmem:[%s4404_s12 + $0x28] sm:$0xff]  }
0x176c   : > { %3491 = vmatprep.subr.mxu1 %v3754_v8 }
0x176e   : > { %v2522_v14 = vpop.permute.xlu0 %2521 }
0x1775   : > { %v3643_v9 = vpop.eup %3642 }
0x1776   : > { %v2392_v10 = vsel %vm735_vm2, %v3643_v9, 0.0 }
0x1777   : > { %2393 = vadd.xlane.f32.xlu1 %v2392_v10  ;;  %v3607_v10 = vld [vmem:[%s4404_s12 + $0x38] sm:$0xff]  }
0x1788   : > { %2523 = vrot.lane.b32.xlu1 %v4142_v6, %s4451_s22  ;;  %s3658_s22 = scalar_lea.vmem %s3053_s23, 16 }
0x1789   : > { %p3659_p11 = scmp.ne.s32.totalorder %s3053_s23, %s3658_s22 }
0x178b   : > { %p3660_p12 = pnand %p3659_p11, %p3907_p5 }
0x178d   : > { %p3661_p13 = pneg %p3660_p12 }
0x1804   : > { %v2394_v11 = vpop.xlane.xlu1 %2393 }
0x1805   : > { %3644 = vrcp.f32 %v2394_v11  ;;  %v3240_v11 = vld [vmem:[%s4403_s11 + $0x1] ss:$0 sm:$0xff] }
0x1808   : > { %v2524_v13 = vpop.permute.xlu1 %2523 }
0x180f   : > { %v3645_v18 = vpop.eup %3644 }
0x1810   : > { %v2396_v12 = vmul.f32 %v3645_v18, %v3643_v9  ;;  %v3606_v9 = vld [vmem:[%s4404_s12 + $0x30] sm:$0xff]  }
0x1812   : > { %3483 = vmatmul.mubr.msk.f32.vlgmr.msra.gmra.mrb[32].mxu1 %vm735_vm2, %v2396_v12 }
0x1813   : > { %3492 = vmatpush3.xpose.msk.msra.mxu1 %vm735_vm2, %v2524_v13  ;;  %3493 = vmatprep.mubr.msk.f32.mxu1 %vm3755_vm1, %v3754_v8 }
0x1814   : > { %3496 = vmatprep.subr.mxu1 %v3754_v8 }
0x1816   : > { %3494 = vmatmul.mubr.msk.f32.vlgmr.msra.gmra.mrb[34].mxu1 %vm735_vm2, %v2522_v14 }
0x1817   : > { %3498 = vmatprep.mubr.msk.f32.mxu1 %vm3755_vm1, %v3754_v8 }
0x18e5   : > { %v2469_v17 = vpop.f32.mrb[32].mxu1 }
0x18e6   : > { %v2473_v19 = vpack.c.bf16 %v2469_v17, %v2469_v17  ;;  %v3484_v20 = vpop.f32.mrb[33].mxu1 }
0x18e8   : > { %3488 = vmatmul.mubr.msk.bf16.vlgmr.msra.gmra.mrb[36].mxu0 %vm735_vm2, %v2473_v19 }
0x18e9   : > { %v2595_v21 = vpop.f32.mrb[34].mxu1  ;;  %3503 = vmatprep.mubr.msk.bf16.mxu0 %vm3755_vm1, %v3754_v8 }
0x18ea   : > { %v2596_v23 = vadd.f32 %v3976_v28, %v2595_v21  ;;  %v3495_v24 = vpop.f32.mrb[35].mxu1 }
0x18ec   : > { %v2599_v25 = vsel %vm735_vm2, %v2596_v23, -inf }
0x18ed   : > { %2600 = vmax.xlane.f32.xlu1 %v2599_v25 }
0x197a   : > { %v2601_v26 = vpop.xlane.xlu1 %2600 }
0x197b   : > { %v2602_v27 = vsub.f32 %v2596_v23, %v2601_v26 }
0x197d   : > { %v2603_v29 = vmul.f32 1.442695, %v2602_v27 }
0x197f   : > { %3646 = vpow2.f32 %v2603_v29  ;;  %v3253_v29 = vld [vmem:[%s4405_s13 + $0x1] ss:$0 sm:$0xff] }
0x1989   : > { %v3647_v30 = vpop.eup %3646 }
0x198a   : > { %v2605_v31 = vsel %vm735_vm2, %v3647_v30, 0.0 }
0x198b   : > { %2606 = vadd.xlane.f32.xlu0 %v2605_v31 }
0x19a1   : > { %2610 = vrot.lane.b32.xlu0 %v4142_v6, %s4452_s20  ;;  %v3212_v6 = vld [vmem:[%s4443_s6 + $0x1c] sm:$0xf]  ;;  %s3664_s6 = scalar_lea.vmem %s3663_s5, 32 }
0x19a2   : > { %v2691_v40 = vsel %vm1067_vm3, %v3212_v6, 0  ;;  %p3666_p1 = scmp.lt.s32.totalorder %s3664_s6, %s3658_s22 }
0x19a3   : > { %3502 = vmatpush3.bf16.msra.mxu0 %v2691_v40  ;;  %v3608_v40 = vld [vmem:[%s4408_s16] sm:$0xff]  }
0x19a4   : > { %3515 = vmatprep.subr.bf16.mxu0 %v3754_v8  ;;  %p3667_p2 = por %p3666_p1, %p3665_p0 }
0x19a6   : > { %p3668_p3 = pnand %p3667_p2, %p3661_p13 }
0x19bb   : > { %v2514_v32 = vpop.f32.mrb[36].mxu0 }
0x19bc   : > { %v2520_v33 = vadd.f32 %v2514_v32, %v2303_v58  ;;  %v3489_v34 = vpop.f32.mrb[37].mxu0  ;;  %v3603_v58 = vld [vmem:[%s4402_s10 + $0x18] sm:$0xff]  }
0x19bd   : > { %v2517_v35 = vpop.f32.mrb[38].mxu0 }
0x19be   : > { %v3490_v28 = vpop.f32.mrb[39].mxu0 }
0x1a18   : > { %v2607_v36 = vpop.xlane.xlu0 %2606 }
0x1a19   : > { %3648 = vrcp.f32 %v2607_v36 }
0x1a1c   : > { %v2611_v37 = vpop.permute.xlu0 %2610 }
0x1a1d   : > { %3497 = vmatpush3.msra.mxu1 %v2611_v37 }
0x1a1e   : > { %3507 = vmatprep.subr.bf16.mxu1 %v3754_v8 }
0x1a23   : > { %v3649_v38 = vpop.eup %3648 }
0x1a24   : > { %v2609_v39 = vmul.f32 %v3649_v38, %v3647_v30 }
0x1a26   : > { %3499 = vmatmul.mubr.msk.f32.vlgmr.msra.gmra.mrb[36].mxu1 %vm735_vm2, %v2609_v39 }
0x1a27   : > { %3511 = vmatprep.mubr.msk.bf16.mxu1 %vm3755_vm1, %v3754_v8  ;;  %3508 = vmatpush3.bf16.msra.mxu1 %v3602_v57 }
0x1a28   : > { %3509 = vmatprep.subr.bf16.mxu1 %v3754_v8 }
0x1a2b   : > { %3510 = vmatpush3.bf16.msra.mxu1 %v3603_v58 }
0x1a2c   : > { %3527 = vmatprep.subr.bf16.mxu1 %v3754_v8 }
0x1af9   : > { %v2682_v41 = vpop.f32.mrb[36].mxu1 }
0x1afa   : > { %v2686_v42 = vpack.c.bf16 %v2682_v41, %v2682_v41  ;;  %v3500_v43 = vpop.f32.mrb[37].mxu1  ;;  %v3609_v41 = vld [vmem:[%s4408_s16 + $0x8] sm:$0xff]  }
0x1afc   : > { %3504 = vmatmul.mubr.msk.bf16.vlgmr.msra.gmra.mrb[40].mxu0 %vm735_vm2, %v2686_v42 }
0x1afd   : > { %3523 = vmatprep.mubr.msk.bf16.mxu0 %vm3755_vm1, %v3754_v8  ;;  %3516 = vmatpush3.bf16.msra.mxu0 %v3604_v5 }
0x1afe   : > { %3517 = vmatprep.subr.bf16.mxu0 %v3754_v8 }
0x1b01   : > { %3518 = vmatpush3.bf16.msra.mxu0 %v3605_v7 }
0x1b02   : > { %3519 = vmatprep.subr.bf16.mxu0 %v3754_v8 }
0x1b05   : > { %3520 = vmatpush3.bf16.msra.mxu0 %v3606_v9 }
0x1b06   : > { %3521 = vmatprep.subr.bf16.mxu0 %v3754_v8 }
0x1b09   : > { %3522 = vmatpush3.bf16.msra.mxu0 %v3607_v10 }
0x1bcf   : > { %v2727_v44 = vpop.f32.mrb[40].mxu0 }
0x1bd0   : > { %v2733_v46 = vadd.f32 %v2727_v44, %v2520_v33  ;;  %v3505_v47 = vpop.f32.mrb[41].mxu0 }
0x1bd1   : > { %v2730_v48 = vpop.f32.mrb[42].mxu0 }
0x1bd2   : > { %v2742_v49 = vadd.f32 %v3230_v45, %v2733_v46  ;;  %v3506_v50 = vpop.f32.mrb[43].mxu0  ;;  %v3261_v46 = vld [vmem:[%s4406_s14 + $0x1] ss:$0 sm:$0xff] }
0x1bd4   : > { %v2743_v51 = vadd.f32 %v2742_v49, %v4132_v2 }
0x1bd6   : > { %v2748_v52 = vsel %vm626_vm0, %v2743_v51, 0.0 }
0x1bd7   : > { %2749 = vadd.xlane.f32.xlu1 %v2748_v52 }
0x1c64   : > { %v2750_v22 = vpop.xlane.xlu1 %2749 }
0x1c65   : > { %v2751_v53 = vmul.f32 0.03125, %v2750_v22 }
0x1c67   : > { %v2752_v54 = vsub.f32 %v2743_v51, %v2751_v53 }
0x1c69   : > { %v2753_v55 = vmul.f32 %v2752_v54, %v2752_v54 }
0x1c6b   : > { %v2754_v56 = vsel %vm626_vm0, %v2753_v55, 0.0 }
0x1c6c   : > { %2755 = vadd.xlane.f32.xlu1 %v2754_v56 }
0x1cf9   : > { %v2756_v2 = vpop.xlane.xlu1 %2755 }
0x1cfa   : > { %v2757_v59 = vmul.f32 0.03125, %v2756_v2 }
0x1cfc   : > { %v2758_v60 = vadd.f32 1e-12, %v2757_v59 }
0x1cfe   : > { %3650 = vrsqrt.f32 %v2758_v60 }
0x1d08   : > { %v3651_v61 = vpop.eup %3650 }
0x1d09   : > { %v2760_v63 = vmul.f32 %v3651_v61, %v2752_v54 }
0x1d0b   : > { %v2767_v1 = vmul.f32 %v3233_v62, %v2760_v63 }
0x1d0d   : > { %v2774_v3 = vadd.f32 %v3234_v0, %v2767_v1 }
0x1d0f   : > { %v2782_v4 = vpack.c.bf16 %v2774_v3, %v2774_v3 }
0x1d11   : > { %3512 = vmatmul.mubr.msk.bf16.vlgmr.msra.gmra.mrb[40].mxu1 %vm626_vm0, %v2782_v4 }
0x1d12   : > { %3531 = vmatprep.mubr.msk.bf16.mxu1 %vm3755_vm1, %v3754_v8  ;;  %3528 = vmatpush3.bf16.msra.mxu1 %v3608_v40 }
0x1d13   : > { %3529 = vmatprep.subr.bf16.mxu1 %v3754_v8  ;;  %v3262_v8 = vld [vmem:[%s4407_s15 + $0x1] ss:$0 sm:$0xff] }
0x1d16   : > { %3530 = vmatpush3.bf16.msra.mxu1 %v3609_v41 }
0x1de4   : > { %v2838_v18 = vpop.f32.mrb[40].mxu1 }
0x1de5   : > { %v2839_v12 = vadd.f32 %v3240_v11, %v2838_v18  ;;  %v3513_v13 = vpop.f32.mrb[41].mxu1 }
0x1de6   : > { %v2841_v14 = vpop.f32.mrb[42].mxu1 }
0x1de7   : > { %v2844_v15 = vmul.f32 %v2839_v12, %v2839_v12  ;;  %v3514_v16 = vpop.f32.mrb[43].mxu1 }
0x1de9   : > { %v2845_v17 = vmul.f32 %v2844_v15, %v2839_v12 }
0x1deb   : > { %v2846_v19 = vmul.f32 0.044715, %v2845_v17 }
0x1ded   : > { %v2847_v20 = vadd.f32 %v2846_v19, %v2839_v12 }
0x1def   : > { %v2848_v21 = vmul.f32 0.7978846, %v2847_v20 }
0x1df1   : > { %3652 = vtanh.f32 %v2848_v21 }
0x1dfb   : > { %v3653_v23 = vpop.eup %3652 }
0x1dfc   : > { %v2850_v24 = vadd.f32 1.0, %v3653_v23 }
0x1dfe   : > { %v2851_v25 = vmul.f32 0.5, %v2850_v24 }
0x1e00   : > { %v2852_v26 = vmul.f32 %v2851_v25, %v2839_v12 }
0x1e02   : > { %v2864_v27 = vpack.c.bf16 %v2852_v26, %v2852_v26 }
0x1e04   : > { %3524 = vmatmul.mubr.msk.bf16.vlgmr.msra.gmra.mrb[44].mxu0 %vm1737_vm4, %v2864_v27 }
0x1ed7   : > { %v2932_v30 = vpop.f32.mrb[44].mxu0 }
0x1ed8   : > { %v2933_v31 = vadd.f32 %v3253_v29, %v2932_v30  ;;  %v3525_v32 = vpop.f32.mrb[45].mxu0 }
0x1ed9   : > { %v2935_v33 = vpop.f32.mrb[46].mxu0 }
0x1eda   : > { %v3526_v34 = vpop.f32.mrb[47].mxu0  ;;  %v2938_v35 = vadd.f32 %v2933_v31, %v2774_v3 }
0x1edc   : > { %v2943_v28 = vsel %vm626_vm0, %v2938_v35, 0.0 }
0x1edd   : > { %2944 = vadd.xlane.f32.xlu1 %v2943_v28 }
0x1f6a   : > { %v2945_v36 = vpop.xlane.xlu1 %2944 }
0x1f6b   : > { %v2946_v37 = vmul.f32 0.03125, %v2945_v36 }
0x1f6d   : > { %v2947_v38 = vsub.f32 %v2938_v35, %v2946_v37 }
0x1f6f   : > { %v2948_v39 = vmul.f32 %v2947_v38, %v2947_v38 }
0x1f71   : > { %v2949_v6 = vsel %vm626_vm0, %v2948_v39, 0.0 }
0x1f72   : > { %2950 = vadd.xlane.f32.xlu1 %v2949_v6 }
0x1fff   : > { %v2951_v42 = vpop.xlane.xlu1 %2950 }
0x2000   : > { %v2952_v43 = vmul.f32 0.03125, %v2951_v42 }
0x2002   : > { %v2953_v44 = vadd.f32 1e-12, %v2952_v43 }
0x2004   : > { %3654 = vrsqrt.f32 %v2953_v44 }
0x200e   : > { %v3655_v45 = vpop.eup %3654 }
0x200f   : > { %v2955_v47 = vmul.f32 %v3655_v45, %v2947_v38 }
0x2011   : > { %v2962_v48 = vmul.f32 %v3261_v46, %v2955_v47 }
0x2013   : > { %v2969_v49 = vadd.f32 %v3262_v8, %v2962_v48 }
0x2015   : > { %v2977_v50 = vpack.c.bf16 %v2969_v49, %v2969_v49  ;;  %2971 = vst.msk [vmem:[%s607_s24] sm:$0x1] %vm2970_vm5, %v2969_v49 }
0x2017   : > { %3532 = vmatmul.mubr.msk.bf16.vlgmr.msra.gmra.mrb[44].mxu1 %vm626_vm0, %v2977_v50 }
0x2018   : > { %3671 = shalt.err (!%p3668_p3)
}
0x2019   : > { %s3672_s24 = scalar_lea.hbm %s4319_s28, 16  ;;  %s3676_s4 = scalar_lea.hbm %s4410_s18, 32 }
0x201a   : > { %p3673_p4 = scmp.ne.s32.totalorder %s4319_s28, %s3672_s24  ;;  %p3677_p9 = scmp.lt.u32.totalorder %s4319_s28, %s4410_s18 }
0x201b   : > { %p3678_p10 = scmp.lt.u32.totalorder %s3676_s4, %s3672_s24  ;;  %p3680_p12 = scmp.lt.u32.totalorder %s3672_s24, %s4319_s28 }
0x201c   : > { %p3674_p7 = pnand %p3673_p4, %p3907_p5 }
0x201d   : > { %p3679_p11 = por %p3678_p10, %p3677_p9 }
0x201e   : > { %p3675_p8 = pneg %p3674_p7 }
0x201f   : > { %p3681_p13 = por %p3680_p12, %p3679_p11 }
0x2021   : > { %p3682_p0 = pnand %p3681_p13, %p3675_p8 }
0x2023   : > { %3685 = shalt.err (!%p3682_p0)
}
0x2024   : > { %3535 = dma.vmem_to_hbm [thread:$0]  (%p3907_p5), %s3053_s23, 16, %s4319_s28, %s3036_s25   ;;  %v2976_v51 = vld [vmem:[%s4409_s17] sm:$0x1] }
0x2025   : > { %s613_s29 = scalar_lea.vmem [#allocation4], %s4305_s2  ;;  %s4453_s20 = sshll.u32 %s3890_s1, 4 }
0x2026   : > { %s3065_s24 = sshll.u32 %s613_s29, 4  ;;  %s4348_s5 = scalar_lea.hbm %s4411_s19, %s4453_s20  ;;  %s4350_s24 = int_to_ptr.vmem [resolvable:$true] %s3065_s24 }
0x2027   : > { %s3040_s28 = scalar_lea.sflag [#allocation5], %s4305_s2  ;;  %s3686_s23 = scalar_lea.vmem %s4350_s24, 16 }
0x2028   : > { %p3687_p1 = scmp.ne.s32.totalorder %s4350_s24, %s3686_s23  ;;  %s3768_s1 = smov [#allocation4]  }
0x2029   : > { %s3690_s25 = sshll.u32 %s3768_s1, 4  ;;  %s3691_s25 = int_to_ptr.vmem [resolvable:$false] %s3690_s25 }
0x202a   : > { %p3688_p2 = pnand %p3687_p1, %p3907_p5  ;;  %s3692_s6 = scalar_lea.vmem %s3691_s25, 32 }
0x202b   : > { %p3693_p4 = scmp.lt.s32.totalorder %s4350_s24, %s3691_s25  ;;  %p3694_p7 = scmp.lt.s32.totalorder %s3692_s6, %s3686_s23 }
0x202c   : > { %p3689_p3 = pneg %p3688_p2 }
0x202d   : > { %p3695_p8 = por %p3694_p7, %p3693_p4 }
0x202f   : > { %p3696_p9 = pnand %p3695_p8, %p3689_p3 }
0x20ea   : > { %v3027_v52 = vpop.f32.mrb[44].mxu1 }
0x20eb   : > { %v3028_v22 = vadd.f32 %v3027_v52, %v2976_v51  ;;  %v3533_v53 = vpop.f32.mrb[45].mxu1 }
0x20ec   : > { %v3030_v54 = vpop.f32.mrb[46].mxu1 }
0x20ed   : > { %3656 = vtanh.f32 %v3028_v22  ;;  %v3534_v55 = vpop.f32.mrb[47].mxu1 }
0x20f7   : > { %v3657_v56 = vpop.eup %3656 }
0x20f8   : > { %3034 = vst.msk [vmem:[%s613_s29] sm:$0x1] %vm2970_vm5, %v3657_v56 }
0x20f9   : > { %3699 = shalt.err (!%p3696_p9)
}
0x20fa   : > { %s3700_s2 = scalar_lea.hbm %s4348_s5, 16  ;;  %s3704_s20 = scalar_lea.hbm %s4411_s19, 32 }
0x20fb   : > { %p3701_p10 = scmp.ne.s32.totalorder %s4348_s5, %s3700_s2  ;;  %p3705_p13 = scmp.lt.u32.totalorder %s4348_s5, %s4411_s19 }
0x20fc   : > { %p3706_p0 = scmp.lt.u32.totalorder %s3704_s20, %s3700_s2  ;;  %p3708_p2 = scmp.lt.u32.totalorder %s3700_s2, %s4348_s5 }
0x20fd   : > { %p3702_p11 = pnand %p3701_p10, %p3907_p5 }
0x20fe   : > { %p3707_p1 = por %p3706_p0, %p3705_p13 }
0x20ff   : > { %p3703_p12 = pneg %p3702_p11 }
0x2100   : > { %p3709_p3 = por %p3708_p2, %p3707_p1 }
0x2102   : > { %p3710_p4 = pnand %p3709_p3, %p3703_p12 }
0x2104   : > { %3713 = shalt.err (!%p3710_p4)
}
0x2105   : > { %3536 = dma.vmem_to_hbm [thread:$0]  (%p3907_p5), %s4350_s24, 16, %s4348_s5, %s3040_s28  }
0x2106 PF: > { %p3546_p7 = scmp.ge.s32.totalorder %s3752_s21, 2  ;;  %s3077_s23 = sand.u32 1, %s3740_s0  }
0x2107   : > { %s3078_s1 = scalar_lea.sflag [#allocation3], %s3077_s23 }
0x2108   : > { %p3540_p8 = pnand %p3546_p7, %p3911_p6 }
0x210a   : > { %3731 = dma.done.wait (!%p3540_p8), %s3078_s1, 16  }
0x210b   : > { %3733 = vsyncadd (!%p3540_p8), %s3078_s1, 4294967280  ;;  %s3086_s25 = scalar_lea.sflag [#allocation5], %s3077_s23 }
0x210c   : > { %3735 = dma.done.wait (!%p3540_p8), %s3086_s25, 16  }
0x210d   : > { %3737 = vsyncadd (!%p3540_p8), %s3086_s25, 4294967280  ;;  %s4454_s21 = sld [smem:[#allocation9_spill]]  ;;  %s4455_s3 = sld [smem:[#allocation8_spill]] }
0x210e   : > { %s4456_s20 = sld [smem:[#allocation10_spill]]  ;;  %s4457_s0 = smov %s3744_s30 }
0x2113   : > { %p33_p5 = scmp.ge.s32.totalorder %s4454_s21, 4   ;;  %s4458_s30 = smov %s4455_s3 }
0x2115   :  { %35 = sbr.rel (!%p33_p5) target bundleno = 13 (0xd), region = 159 }
0x211c   :  { %3090 = vsyncpa [#allocation3], 1 }
0x211d   :  { %3092 = vsyncpa [#allocation3 + $0x1], 1 }
0x211e   :  { %3093 = vsyncpa [#allocation5], 1 }
0x211f   :  { %3095 = vsyncpa [#allocation5 + $0x1], 1 }

</bundles_post_ra>
